<compile_context>
chip_gen: v7x
topology: tpu7x:2x2x1
jax: 0.10.0
libtpu: 0.0.40
codegen_flags: <defaults>
</compile_context>

<pallas_src>
import math
from functools import partial

import jax
import jax.numpy as jnp
from jax import lax
from jax.experimental import pallas as pl
from jax.experimental.pallas import tpu as pltpu


def _layer_norm(v, g, b, eps):
    mu = jnp.mean(v, axis=-1, keepdims=True)
    var = jnp.mean((v - mu) ** 2, axis=-1, keepdims=True)
    return (v - mu) * lax.rsqrt(var + eps) * g + b


def _decoder_layer_kernel(x_ref, ln1g_ref, ln1b_ref, wqkv_ref, bqkv_ref,
                          wo_ref, bo_ref, w1_ref, b1_ref, w2_ref, b2_ref,
                          ln2g_ref, ln2b_ref, out_ref, *, num_heads, eps):
    # x_ref: (TB, L, D) f32 tile -- TB batch elements per grid step.
    TB, L, D = x_ref.shape
    H = num_heads
    dh = D // H
    N = TB * L
    f32 = jnp.float32
    mm = wqkv_ref.dtype          # matmul operand dtype (bf16), f32 accumulate

    # Flatten (TB, L) -> rows so every projection / FFN matmul is a single
    # lane-dense 2-D MXU op with M = TB*L rows.
    x = x_ref[...].reshape(N, D).astype(f32)

    # ---------------- LayerNorm 1 (f32, VPU/EUP) ----------------
    xn = _layer_norm(x, ln1g_ref[...], ln1b_ref[...], eps)

    # ---------------- fused QKV projection ----------------------
    # wqkv_ref is pre-transposed (D, 3D); 1/sqrt(dh) already folded into Q.
    qkv = jnp.dot(xn.astype(mm), wqkv_ref[...],
                  preferred_element_type=f32) + bqkv_ref[...]        # (N, 3D)

    # ---------------- per-head batched self-attention -----------
    # Heads are a short static (unrolled) loop; each head is a batched
    # contraction over dh with TB as the batch dim -- exact FLOP count,
    # no masks, no gather matmul.
    ctx_heads = []
    for h in range(H):
        q_h = qkv[:, h * dh:(h + 1) * dh].reshape(TB, L, dh)
        k_h = qkv[:, D + h * dh:D + (h + 1) * dh].reshape(TB, L, dh)
        v_h = qkv[:, 2 * D + h * dh:2 * D + (h + 1) * dh].reshape(TB, L, dh)

        s = jnp.einsum('bqd,bkd->bqk', q_h.astype(mm), k_h.astype(mm),
                       preferred_element_type=f32)                   # (TB, L, L)
        s = s - jnp.max(s, axis=-1, keepdims=True)
        p = jnp.exp(s)
        p = p * pl.reciprocal(jnp.sum(p, axis=-1, keepdims=True), approx=True)

        ctx_heads.append(
            jnp.einsum('bqk,bkd->bqd', p.astype(mm), v_h.astype(mm),
                       preferred_element_type=f32))                  # (TB, L, dh)

    ctx = jnp.concatenate(ctx_heads, axis=-1).reshape(N, D)          # (N, D)

    attn = jnp.dot(ctx.astype(mm), wo_ref[...],
                   preferred_element_type=f32) + bo_ref[...]         # (N, D)

    # dropout == identity; residual adds the *normalized* input (module spec)
    x1 = attn + xn
    x2 = _layer_norm(x1, ln2g_ref[...], ln2b_ref[...], eps)

    # ---------------- FFN: Linear -> ReLU -> Linear --------------
    hid = jnp.dot(x2.astype(mm), w1_ref[...],
                  preferred_element_type=f32) + b1_ref[...]
    hid = jnp.maximum(hid, 0.0)
    ff = jnp.dot(hid.astype(mm), w2_ref[...],
                 preferred_element_type=f32) + b2_ref[...]

    out_ref[...] = (ff + x2).reshape(TB, L, D).astype(out_ref.dtype)


def transformer_decoder_layer(target, params, num_heads, *, eps=1e-12,
                              matmul_dtype=jnp.bfloat16,
                              target_rows_per_block=256,
                              interpret=False):
    """target: (L, B, D) f32 -> (L, B, D) f32 (PyTorch seq-first layout)."""
    L, B, D = target.shape
    (ln1_g, ln1_b, in_proj_w, in_proj_b, out_proj_w, out_proj_b,
     ff1_w, ff1_b, ff2_w, ff2_b, ln2_g, ln2_b) = params
    assert D % num_heads == 0
    dh = D // num_heads
    hidden = ff1_w.shape[0]
    scale = 1.0 / math.sqrt(dh)

    # ---- wrapper-side layout plumbing (done once, free) ----
    # Fold the query scale into the Q rows of in_proj; pre-transpose all
    # weights so the kernel does plain (M,K)x(K,N) dots with no in-kernel .T.
    wq = in_proj_w[:D] * scale
    wqkv_t = jnp.concatenate([wq, in_proj_w[D:]], axis=0).T.astype(matmul_dtype)  # (D,3D)
    bqkv = jnp.concatenate([in_proj_b[:, :D] * scale, in_proj_b[:, D:]], axis=1)  # (1,3D) f32
    wo_t = out_proj_w.T.astype(matmul_dtype)    # (D, D)
    w1_t = ff1_w.T.astype(matmul_dtype)         # (D, hidden)
    w2_t = ff2_w.T.astype(matmul_dtype)         # (hidden, D)

    # Batch-first so every grid step sees a clean (TB, L, D) tile.
    # TODO(synk): for production shapes, fold this transpose (and the inverse
    # one on the output) into the BlockSpec index_map to avoid the extra HBM
    # round trips (largest relative win on v5e).
    x = jnp.transpose(target, (1, 0, 2))        # (B, L, D)

    # Batch-block size: TB*L rows ~ target_rows_per_block to fill the MXU M
    # dim and amortize the ~0.35us per-grid-step overhead; TB divides B so no
    # padding is needed.
    max_tb = max(1, min(B, target_rows_per_block // max(L, 1)))
    tb = 1
    for d in range(1, B + 1):
        if B % d == 0 and d <= max_tb:
            tb = d
    grid = (B // tb,)

    kparams = (ln1_g, ln1_b, wqkv_t, bqkv, wo_t, out_proj_b,
               w1_t, ff1_b, w2_t, ff2_b, ln2_g, ln2_b)

    def param_spec(p):
        # Full-array block, constant index map -> DMA'd once, stays resident.
        # TODO(synk): on v7x add pipeline_mode=pl.Buffered(1) to drop the
        # second (never-used) weight buffer and halve resident-weight VMEM.
        nd = p.ndim

        def idx(i):
            return (0,) * nd

        return pl.BlockSpec(p.shape, idx)

    in_specs = ([pl.BlockSpec((tb, L, D), lambda i: (i, 0, 0))]
                + [param_spec(p) for p in kparams])
    out_specs = pl.BlockSpec((tb, L, D), lambda i: (i, 0, 0))

    N = B * L
    flops = (2 * N * D * 3 * D                  # qkv proj
             + 4 * B * L * L * D                # QK^T and P@V over all heads
             + 2 * N * D * D                    # out proj
             + 4 * N * D * hidden)              # FFN
    transc = B * num_heads * L * L + B * num_heads * L + 2 * N
    cost = pl.CostEstimate(
        flops=int(flops),
        transcendentals=int(transc),
        bytes_accessed=int(2 * x.size * 4
                           + sum(int(p.size) * p.dtype.itemsize for p in kparams)),
    )

    out = pl.pallas_call(
        partial(_decoder_layer_kernel, num_heads=num_heads, eps=eps),
        out_shape=jax.ShapeDtypeStruct((B, L, D), jnp.float32),
        grid_spec=pltpu.PrefetchScalarGridSpec(
            num_scalar_prefetch=0,
            grid=grid,
            in_specs=in_specs,
            out_specs=out_specs,
        ),
        compiler_params=pltpu.CompilerParams(
            dimension_semantics=("parallel",),
            vmem_limit_bytes=64 * 1024 * 1024,
        ),
        cost_estimate=cost,
        interpret=interpret,
    )(x, *kparams)

    return jnp.transpose(out, (1, 0, 2))        # back to (L, B, D)


def init_params(key, input_dim, hidden_dim):
    """Deterministic synthetic parameters matching nn.MultiheadAttention /
    nn.Linear / nn.LayerNorm shapes (all f32, PyTorch layouts)."""
    D, H = input_dim, hidden_dim
    ks = jax.random.split(key, 8)
    s = 0.05
    f32 = jnp.float32
    ln1_g = jnp.ones((1, D), f32)
    ln1_b = jnp.zeros((1, D), f32)
    in_proj_w = s * jax.random.normal(ks[0], (3 * D, D), f32)   # [Wq; Wk; Wv]
    in_proj_b = s * jax.random.normal(ks[1], (1, 3 * D), f32)
    out_proj_w = s * jax.random.normal(ks[2], (D, D), f32)
    out_proj_b = s * jax.random.normal(ks[3], (1, D), f32)
    ff1_w = s * jax.random.normal(ks[4], (H, D), f32)
    ff1_b = s * jax.random.normal(ks[5], (1, H), f32)
    ff2_w = s * jax.random.normal(ks[6], (D, H), f32)
    ff2_b = s * jax.random.normal(ks[7], (1, D), f32)
    ln2_g = jnp.ones((1, D), f32)
    ln2_b = jnp.zeros((1, D), f32)
    return (ln1_g, ln1_b, in_proj_w, in_proj_b, out_proj_w, out_proj_b,
            ff1_w, ff1_b, ff2_w, ff2_b, ln2_g, ln2_b)


def _reference(target, params, num_heads, eps=1e-12):
    """Pure-JAX f32 reference with the module's exact forward semantics."""
    (ln1_g, ln1_b, in_proj_w, in_proj_b, out_proj_w, out_proj_b,
     ff1_w, ff1_b, ff2_w, ff2_b, ln2_g, ln2_b) = params
    L, B, D = target.shape
    dh = D // num_heads

    def ln(v, g, b):
        mu = jnp.mean(v, axis=-1, keepdims=True)
        var = jnp.mean((v - mu) ** 2, axis=-1, keepdims=True)
        return (v - mu) / jnp.sqrt(var + eps) * g + b

    x = ln(target, ln1_g, ln1_b)
    qkv = jnp.einsum("lbd,ed->lbe", x, in_proj_w) + in_proj_b
    q, k, v = qkv[..., :D], qkv[..., D:2 * D], qkv[..., 2 * D:]
    q = q / math.sqrt(dh)
    qh = q.reshape(L, B, num_heads, dh)
    kh = k.reshape(L, B, num_heads, dh)
    vh = v.reshape(L, B, num_heads, dh)
    s = jnp.einsum("qbhd,kbhd->bhqk", qh, kh)
    p = jax.nn.softmax(s, axis=-1)
    ctx = jnp.einsum("bhqk,kbhd->qbhd", p, vh).reshape(L, B, D)
    attn = jnp.einsum("lbd,ed->lbe", ctx, out_proj_w) + out_proj_b
    x = attn + x
    y = ln(x, ln2_g, ln2_b)
    hid = jax.nn.relu(jnp.einsum("lbd,hd->lbh", y, ff1_w) + ff1_b)
    ff = jnp.einsum("lbh,dh->lbd", hid, ff2_w) + ff2_b
    return ff + y


if __name__ == "__main__":
    # Small shapes implied by the forward: target is (L, B, D).
    L, B, D = 8, 2, 32
    NUM_HEADS = 4
    HIDDEN = 64

    key = jax.random.PRNGKey(0)
    k_x, k_p = jax.random.split(key)
    target = jax.random.normal(k_x, (L, B, D), jnp.float32)
    params = init_params(k_p, D, HIDDEN)

    out = transformer_decoder_layer(target, params, NUM_HEADS)
    out = jax.block_until_ready(out)
    assert out.shape == (L, B, D) and out.dtype == jnp.float32

    ref = _reference(target, params, NUM_HEADS)
    err = float(jnp.max(jnp.abs(out - ref)))
    assert err < 5e-2, f"kernel/reference mismatch: max abs err = {err}"
    print("KERNEL_OK")
</pallas_src>

<mosaic_0001>
module attributes {stable_mosaic.version = 11 : i64} {
  func.func @_decoder_layer_kernel(%arg0: i32, %arg1: memref<2x8x32xf32, #tpu.memory_space<vmem>>, %arg2: memref<1x32xf32, #tpu.memory_space<vmem>>, %arg3: memref<1x32xf32, #tpu.memory_space<vmem>>, %arg4: memref<32x96xbf16, #tpu.memory_space<vmem>>, %arg5: memref<1x96xf32, #tpu.memory_space<vmem>>, %arg6: memref<32x32xbf16, #tpu.memory_space<vmem>>, %arg7: memref<1x32xf32, #tpu.memory_space<vmem>>, %arg8: memref<32x64xbf16, #tpu.memory_space<vmem>>, %arg9: memref<1x64xf32, #tpu.memory_space<vmem>>, %arg10: memref<64x32xbf16, #tpu.memory_space<vmem>>, %arg11: memref<1x32xf32, #tpu.memory_space<vmem>>, %arg12: memref<1x32xf32, #tpu.memory_space<vmem>>, %arg13: memref<1x32xf32, #tpu.memory_space<vmem>>, %arg14: memref<2x8x32xf32, #tpu.memory_space<vmem>>) attributes {dimension_semantics = [#tpu.dimension_semantics<parallel>], iteration_bounds = array<i64: 1>, scalar_prefetch = 0 : i64, scratch_operands = 0 : i64, tpu.core_type = #tpu.core_type<tc>, window_params = [{transform_indices = @transform_0, window_bounds = array<i64: 2, 8, 32>}, {pipeline_mode = #tpu.pipeline_mode<synchronous>, transform_indices = @transform_1, window_bounds = array<i64: 1, 32>}, {pipeline_mode = #tpu.pipeline_mode<synchronous>, transform_indices = @transform_2, window_bounds = array<i64: 1, 32>}, {pipeline_mode = #tpu.pipeline_mode<synchronous>, transform_indices = @transform_3, window_bounds = array<i64: 32, 96>}, {pipeline_mode = #tpu.pipeline_mode<synchronous>, transform_indices = @transform_4, window_bounds = array<i64: 1, 96>}, {pipeline_mode = #tpu.pipeline_mode<synchronous>, transform_indices = @transform_5, window_bounds = array<i64: 32, 32>}, {pipeline_mode = #tpu.pipeline_mode<synchronous>, transform_indices = @transform_6, window_bounds = array<i64: 1, 32>}, {pipeline_mode = #tpu.pipeline_mode<synchronous>, transform_indices = @transform_7, window_bounds = array<i64: 32, 64>}, {pipeline_mode = #tpu.pipeline_mode<synchronous>, transform_indices = @transform_8, window_bounds = array<i64: 1, 64>}, {pipeline_mode = #tpu.pipeline_mode<synchronous>, transform_indices = @transform_9, window_bounds = array<i64: 64, 32>}, {pipeline_mode = #tpu.pipeline_mode<synchronous>, transform_indices = @transform_10, window_bounds = array<i64: 1, 32>}, {pipeline_mode = #tpu.pipeline_mode<synchronous>, transform_indices = @transform_11, window_bounds = array<i64: 1, 32>}, {pipeline_mode = #tpu.pipeline_mode<synchronous>, transform_indices = @transform_12, window_bounds = array<i64: 1, 32>}, {transform_indices = @transform_13, window_bounds = array<i64: 2, 8, 32>}]} {
    %c0 = arith.constant 0 : index
    %c0_0 = arith.constant 0 : index
    %c0_1 = arith.constant 0 : index
    %0 = vector.load %arg1[%c0, %c0_0, %c0_1] : memref<2x8x32xf32, #tpu.memory_space<vmem>>, vector<2x8x32xf32>
    %1 = vector.shape_cast %0 : vector<2x8x32xf32> to vector<16x32xf32>
    %c0_2 = arith.constant 0 : index
    %c0_3 = arith.constant 0 : index
    %2 = vector.load %arg2[%c0_2, %c0_3] : memref<1x32xf32, #tpu.memory_space<vmem>>, vector<1x32xf32>
    %c0_4 = arith.constant 0 : index
    %c0_5 = arith.constant 0 : index
    %3 = vector.load %arg3[%c0_4, %c0_5] : memref<1x32xf32, #tpu.memory_space<vmem>>, vector<1x32xf32>
    %cst = arith.constant dense<0.000000e+00> : vector<16xf32>
    %4 = vector.multi_reduction <add>, %1, %cst [1] : vector<16x32xf32> to vector<16xf32>
    %5 = vector.shape_cast %4 : vector<16xf32> to vector<16x1xf32>
    %cst_6 = arith.constant 3.200000e+01 : f32
    %6 = vector.broadcast %cst_6 : f32 to vector<16x1xf32>
    %7 = arith.divf %5, %6 : vector<16x1xf32>
    %8 = vector.broadcast %7 : vector<16x1xf32> to vector<16x32xf32>
    %9 = arith.subf %1, %8 : vector<16x32xf32>
    %10 = arith.mulf %9, %9 : vector<16x32xf32>
    %cst_7 = arith.constant dense<0.000000e+00> : vector<16xf32>
    %11 = vector.multi_reduction <add>, %10, %cst_7 [1] : vector<16x32xf32> to vector<16xf32>
    %12 = vector.shape_cast %11 : vector<16xf32> to vector<16x1xf32>
    %cst_8 = arith.constant 3.200000e+01 : f32
    %13 = vector.broadcast %cst_8 : f32 to vector<16x1xf32>
    %14 = arith.divf %12, %13 : vector<16x1xf32>
    %15 = vector.broadcast %7 : vector<16x1xf32> to vector<16x32xf32>
    %16 = arith.subf %1, %15 : vector<16x32xf32>
    %cst_9 = arith.constant 9.99999996E-13 : f32
    %17 = vector.broadcast %cst_9 : f32 to vector<16x1xf32>
    %18 = arith.addf %14, %17 : vector<16x1xf32>
    %19 = math.rsqrt %18 : vector<16x1xf32>
    %20 = vector.broadcast %19 : vector<16x1xf32> to vector<16x32xf32>
    %21 = arith.mulf %16, %20 : vector<16x32xf32>
    %22 = vector.broadcast %2 : vector<1x32xf32> to vector<16x32xf32>
    %23 = arith.mulf %21, %22 : vector<16x32xf32>
    %24 = vector.broadcast %3 : vector<1x32xf32> to vector<16x32xf32>
    %25 = arith.addf %23, %24 : vector<16x32xf32>
    %26 = arith.truncf %25 : vector<16x32xf32> to vector<16x32xbf16>
    %c0_10 = arith.constant 0 : index
    %c0_11 = arith.constant 0 : index
    %27 = vector.load %arg4[%c0_10, %c0_11] : memref<32x96xbf16, #tpu.memory_space<vmem>>, vector<32x96xbf16>
    %cst_12 = arith.constant dense<0.000000e+00> : vector<16x96xf32>
    %28 = tpu.matmul %26, %27, %cst_12 {dimension_numbers = #tpu.dot_dimension_numbers<[1], [0], [0], [1], [0, 0, 1, 1], [], []>} : vector<16x32xbf16>, vector<32x96xbf16>, vector<16x96xf32> -> vector<16x96xf32>
    %c0_13 = arith.constant 0 : index
    %c0_14 = arith.constant 0 : index
    %29 = vector.load %arg5[%c0_13, %c0_14] : memref<1x96xf32, #tpu.memory_space<vmem>>, vector<1x96xf32>
    %30 = vector.broadcast %29 : vector<1x96xf32> to vector<16x96xf32>
    %31 = arith.addf %28, %30 : vector<16x96xf32>
    %32 = vector.extract_strided_slice %31 {offsets = [0, 0], sizes = [16, 8], strides = [1, 1]} : vector<16x96xf32> to vector<16x8xf32>
    %33 = vector.shape_cast %32 : vector<16x8xf32> to vector<2x8x8xf32>
    %34 = vector.extract_strided_slice %31 {offsets = [0, 32], sizes = [16, 8], strides = [1, 1]} : vector<16x96xf32> to vector<16x8xf32>
    %35 = vector.shape_cast %34 : vector<16x8xf32> to vector<2x8x8xf32>
    %36 = vector.extract_strided_slice %31 {offsets = [0, 64], sizes = [16, 8], strides = [1, 1]} : vector<16x96xf32> to vector<16x8xf32>
    %37 = vector.shape_cast %36 : vector<16x8xf32> to vector<2x8x8xf32>
    %38 = arith.truncf %33 : vector<2x8x8xf32> to vector<2x8x8xbf16>
    %39 = arith.truncf %35 : vector<2x8x8xf32> to vector<2x8x8xbf16>
    "tpu.trace_start"() <{level = 10 : i32, message = "bqd,bkd->bqk"}> : () -> ()
    %cst_15 = arith.constant dense<0.000000e+00> : vector<2x8x8xf32>
    %40 = tpu.matmul %38, %39, %cst_15 {dimension_numbers = #tpu.dot_dimension_numbers<[2], [2], [1], [1], [0, 0, 0, 1, 1, 1], [0], [0]>} : vector<2x8x8xbf16>, vector<2x8x8xbf16>, vector<2x8x8xf32> -> vector<2x8x8xf32>
    "tpu.trace_stop"() : () -> ()
    %cst_16 = arith.constant dense<0xFF800000> : vector<2x8xf32>
    %41 = vector.multi_reduction <maximumf>, %40, %cst_16 [2] : vector<2x8x8xf32> to vector<2x8xf32>
    %42 = vector.shape_cast %41 : vector<2x8xf32> to vector<2x8x1xf32>
    %43 = vector.broadcast %42 : vector<2x8x1xf32> to vector<2x8x8xf32>
    %44 = arith.subf %40, %43 : vector<2x8x8xf32>
    %45 = math.exp %44 : vector<2x8x8xf32>
    %cst_17 = arith.constant dense<0.000000e+00> : vector<2x8xf32>
    %46 = vector.multi_reduction <add>, %45, %cst_17 [2] : vector<2x8x8xf32> to vector<2x8xf32>
    %47 = vector.shape_cast %46 : vector<2x8xf32> to vector<2x8x1xf32>
    %48 = tpu.reciprocal %47 {approx = true} : vector<2x8x1xf32> -> vector<2x8x1xf32>
    %49 = vector.broadcast %48 : vector<2x8x1xf32> to vector<2x8x8xf32>
    %50 = arith.mulf %45, %49 : vector<2x8x8xf32>
    %51 = arith.truncf %50 : vector<2x8x8xf32> to vector<2x8x8xbf16>
    %52 = arith.truncf %37 : vector<2x8x8xf32> to vector<2x8x8xbf16>
    "tpu.trace_start"() <{level = 10 : i32, message = "bqk,bkd->bqd"}> : () -> ()
    %cst_18 = arith.constant dense<0.000000e+00> : vector<2x8x8xf32>
    %53 = tpu.matmul %51, %52, %cst_18 {dimension_numbers = #tpu.dot_dimension_numbers<[2], [1], [1], [2], [0, 0, 0, 1, 1, 2], [0], [0]>} : vector<2x8x8xbf16>, vector<2x8x8xbf16>, vector<2x8x8xf32> -> vector<2x8x8xf32>
    "tpu.trace_stop"() : () -> ()
    %54 = vector.extract_strided_slice %31 {offsets = [0, 8], sizes = [16, 8], strides = [1, 1]} : vector<16x96xf32> to vector<16x8xf32>
    %55 = vector.shape_cast %54 : vector<16x8xf32> to vector<2x8x8xf32>
    %56 = vector.extract_strided_slice %31 {offsets = [0, 40], sizes = [16, 8], strides = [1, 1]} : vector<16x96xf32> to vector<16x8xf32>
    %57 = vector.shape_cast %56 : vector<16x8xf32> to vector<2x8x8xf32>
    %58 = vector.extract_strided_slice %31 {offsets = [0, 72], sizes = [16, 8], strides = [1, 1]} : vector<16x96xf32> to vector<16x8xf32>
    %59 = vector.shape_cast %58 : vector<16x8xf32> to vector<2x8x8xf32>
    %60 = arith.truncf %55 : vector<2x8x8xf32> to vector<2x8x8xbf16>
    %61 = arith.truncf %57 : vector<2x8x8xf32> to vector<2x8x8xbf16>
    "tpu.trace_start"() <{level = 10 : i32, message = "bqd,bkd->bqk"}> : () -> ()
    %cst_19 = arith.constant dense<0.000000e+00> : vector<2x8x8xf32>
    %62 = tpu.matmul %60, %61, %cst_19 {dimension_numbers = #tpu.dot_dimension_numbers<[2], [2], [1], [1], [0, 0, 0, 1, 1, 1], [0], [0]>} : vector<2x8x8xbf16>, vector<2x8x8xbf16>, vector<2x8x8xf32> -> vector<2x8x8xf32>
    "tpu.trace_stop"() : () -> ()
    %cst_20 = arith.constant dense<0xFF800000> : vector<2x8xf32>
    %63 = vector.multi_reduction <maximumf>, %62, %cst_20 [2] : vector<2x8x8xf32> to vector<2x8xf32>
    %64 = vector.shape_cast %63 : vector<2x8xf32> to vector<2x8x1xf32>
    %65 = vector.broadcast %64 : vector<2x8x1xf32> to vector<2x8x8xf32>
    %66 = arith.subf %62, %65 : vector<2x8x8xf32>
    %67 = math.exp %66 : vector<2x8x8xf32>
    %cst_21 = arith.constant dense<0.000000e+00> : vector<2x8xf32>
    %68 = vector.multi_reduction <add>, %67, %cst_21 [2] : vector<2x8x8xf32> to vector<2x8xf32>
    %69 = vector.shape_cast %68 : vector<2x8xf32> to vector<2x8x1xf32>
    %70 = tpu.reciprocal %69 {approx = true} : vector<2x8x1xf32> -> vector<2x8x1xf32>
    %71 = vector.broadcast %70 : vector<2x8x1xf32> to vector<2x8x8xf32>
    %72 = arith.mulf %67, %71 : vector<2x8x8xf32>
    %73 = arith.truncf %72 : vector<2x8x8xf32> to vector<2x8x8xbf16>
    %74 = arith.truncf %59 : vector<2x8x8xf32> to vector<2x8x8xbf16>
    "tpu.trace_start"() <{level = 10 : i32, message = "bqk,bkd->bqd"}> : () -> ()
    %cst_22 = arith.constant dense<0.000000e+00> : vector<2x8x8xf32>
    %75 = tpu.matmul %73, %74, %cst_22 {dimension_numbers = #tpu.dot_dimension_numbers<[2], [1], [1], [2], [0, 0, 0, 1, 1, 2], [0], [0]>} : vector<2x8x8xbf16>, vector<2x8x8xbf16>, vector<2x8x8xf32> -> vector<2x8x8xf32>
    "tpu.trace_stop"() : () -> ()
    %76 = vector.extract_strided_slice %31 {offsets = [0, 16], sizes = [16, 8], strides = [1, 1]} : vector<16x96xf32> to vector<16x8xf32>
    %77 = vector.shape_cast %76 : vector<16x8xf32> to vector<2x8x8xf32>
    %78 = vector.extract_strided_slice %31 {offsets = [0, 48], sizes = [16, 8], strides = [1, 1]} : vector<16x96xf32> to vector<16x8xf32>
    %79 = vector.shape_cast %78 : vector<16x8xf32> to vector<2x8x8xf32>
    %80 = vector.extract_strided_slice %31 {offsets = [0, 80], sizes = [16, 8], strides = [1, 1]} : vector<16x96xf32> to vector<16x8xf32>
    %81 = vector.shape_cast %80 : vector<16x8xf32> to vector<2x8x8xf32>
    %82 = arith.truncf %77 : vector<2x8x8xf32> to vector<2x8x8xbf16>
    %83 = arith.truncf %79 : vector<2x8x8xf32> to vector<2x8x8xbf16>
    "tpu.trace_start"() <{level = 10 : i32, message = "bqd,bkd->bqk"}> : () -> ()
    %cst_23 = arith.constant dense<0.000000e+00> : vector<2x8x8xf32>
    %84 = tpu.matmul %82, %83, %cst_23 {dimension_numbers = #tpu.dot_dimension_numbers<[2], [2], [1], [1], [0, 0, 0, 1, 1, 1], [0], [0]>} : vector<2x8x8xbf16>, vector<2x8x8xbf16>, vector<2x8x8xf32> -> vector<2x8x8xf32>
    "tpu.trace_stop"() : () -> ()
    %cst_24 = arith.constant dense<0xFF800000> : vector<2x8xf32>
    %85 = vector.multi_reduction <maximumf>, %84, %cst_24 [2] : vector<2x8x8xf32> to vector<2x8xf32>
    %86 = vector.shape_cast %85 : vector<2x8xf32> to vector<2x8x1xf32>
    %87 = vector.broadcast %86 : vector<2x8x1xf32> to vector<2x8x8xf32>
    %88 = arith.subf %84, %87 : vector<2x8x8xf32>
    %89 = math.exp %88 : vector<2x8x8xf32>
    %cst_25 = arith.constant dense<0.000000e+00> : vector<2x8xf32>
    %90 = vector.multi_reduction <add>, %89, %cst_25 [2] : vector<2x8x8xf32> to vector<2x8xf32>
    %91 = vector.shape_cast %90 : vector<2x8xf32> to vector<2x8x1xf32>
    %92 = tpu.reciprocal %91 {approx = true} : vector<2x8x1xf32> -> vector<2x8x1xf32>
    %93 = vector.broadcast %92 : vector<2x8x1xf32> to vector<2x8x8xf32>
    %94 = arith.mulf %89, %93 : vector<2x8x8xf32>
    %95 = arith.truncf %94 : vector<2x8x8xf32> to vector<2x8x8xbf16>
    %96 = arith.truncf %81 : vector<2x8x8xf32> to vector<2x8x8xbf16>
    "tpu.trace_start"() <{level = 10 : i32, message = "bqk,bkd->bqd"}> : () -> ()
    %cst_26 = arith.constant dense<0.000000e+00> : vector<2x8x8xf32>
    %97 = tpu.matmul %95, %96, %cst_26 {dimension_numbers = #tpu.dot_dimension_numbers<[2], [1], [1], [2], [0, 0, 0, 1, 1, 2], [0], [0]>} : vector<2x8x8xbf16>, vector<2x8x8xbf16>, vector<2x8x8xf32> -> vector<2x8x8xf32>
    "tpu.trace_stop"() : () -> ()
    %98 = vector.extract_strided_slice %31 {offsets = [0, 24], sizes = [16, 8], strides = [1, 1]} : vector<16x96xf32> to vector<16x8xf32>
    %99 = vector.shape_cast %98 : vector<16x8xf32> to vector<2x8x8xf32>
    %100 = vector.extract_strided_slice %31 {offsets = [0, 56], sizes = [16, 8], strides = [1, 1]} : vector<16x96xf32> to vector<16x8xf32>
    %101 = vector.shape_cast %100 : vector<16x8xf32> to vector<2x8x8xf32>
    %102 = vector.extract_strided_slice %31 {offsets = [0, 88], sizes = [16, 8], strides = [1, 1]} : vector<16x96xf32> to vector<16x8xf32>
    %103 = vector.shape_cast %102 : vector<16x8xf32> to vector<2x8x8xf32>
    %104 = arith.truncf %99 : vector<2x8x8xf32> to vector<2x8x8xbf16>
    %105 = arith.truncf %101 : vector<2x8x8xf32> to vector<2x8x8xbf16>
    "tpu.trace_start"() <{level = 10 : i32, message = "bqd,bkd->bqk"}> : () -> ()
    %cst_27 = arith.constant dense<0.000000e+00> : vector<2x8x8xf32>
    %106 = tpu.matmul %104, %105, %cst_27 {dimension_numbers = #tpu.dot_dimension_numbers<[2], [2], [1], [1], [0, 0, 0, 1, 1, 1], [0], [0]>} : vector<2x8x8xbf16>, vector<2x8x8xbf16>, vector<2x8x8xf32> -> vector<2x8x8xf32>
    "tpu.trace_stop"() : () -> ()
    %cst_28 = arith.constant dense<0xFF800000> : vector<2x8xf32>
    %107 = vector.multi_reduction <maximumf>, %106, %cst_28 [2] : vector<2x8x8xf32> to vector<2x8xf32>
    %108 = vector.shape_cast %107 : vector<2x8xf32> to vector<2x8x1xf32>
    %109 = vector.broadcast %108 : vector<2x8x1xf32> to vector<2x8x8xf32>
    %110 = arith.subf %106, %109 : vector<2x8x8xf32>
    %111 = math.exp %110 : vector<2x8x8xf32>
    %cst_29 = arith.constant dense<0.000000e+00> : vector<2x8xf32>
    %112 = vector.multi_reduction <add>, %111, %cst_29 [2] : vector<2x8x8xf32> to vector<2x8xf32>
    %113 = vector.shape_cast %112 : vector<2x8xf32> to vector<2x8x1xf32>
    %114 = tpu.reciprocal %113 {approx = true} : vector<2x8x1xf32> -> vector<2x8x1xf32>
    %115 = vector.broadcast %114 : vector<2x8x1xf32> to vector<2x8x8xf32>
    %116 = arith.mulf %111, %115 : vector<2x8x8xf32>
    %117 = arith.truncf %116 : vector<2x8x8xf32> to vector<2x8x8xbf16>
    %118 = arith.truncf %103 : vector<2x8x8xf32> to vector<2x8x8xbf16>
    "tpu.trace_start"() <{level = 10 : i32, message = "bqk,bkd->bqd"}> : () -> ()
    %cst_30 = arith.constant dense<0.000000e+00> : vector<2x8x8xf32>
    %119 = tpu.matmul %117, %118, %cst_30 {dimension_numbers = #tpu.dot_dimension_numbers<[2], [1], [1], [2], [0, 0, 0, 1, 1, 2], [0], [0]>} : vector<2x8x8xbf16>, vector<2x8x8xbf16>, vector<2x8x8xf32> -> vector<2x8x8xf32>
    "tpu.trace_stop"() : () -> ()
    %120 = tpu.concatenate %53, %75, %97, %119 in 2 : vector<2x8x8xf32>, vector<2x8x8xf32>, vector<2x8x8xf32>, vector<2x8x8xf32> -> vector<2x8x32xf32>
    %121 = vector.shape_cast %120 : vector<2x8x32xf32> to vector<16x32xf32>
    %122 = arith.truncf %121 : vector<16x32xf32> to vector<16x32xbf16>
    %c0_31 = arith.constant 0 : index
    %c0_32 = arith.constant 0 : index
    %123 = vector.load %arg6[%c0_31, %c0_32] : memref<32x32xbf16, #tpu.memory_space<vmem>>, vector<32x32xbf16>
    %cst_33 = arith.constant dense<0.000000e+00> : vector<16x32xf32>
    %124 = tpu.matmul %122, %123, %cst_33 {dimension_numbers = #tpu.dot_dimension_numbers<[1], [0], [0], [1], [0, 0, 1, 1], [], []>} : vector<16x32xbf16>, vector<32x32xbf16>, vector<16x32xf32> -> vector<16x32xf32>
    %c0_34 = arith.constant 0 : index
    %c0_35 = arith.constant 0 : index
    %125 = vector.load %arg7[%c0_34, %c0_35] : memref<1x32xf32, #tpu.memory_space<vmem>>, vector<1x32xf32>
    %126 = vector.broadcast %125 : vector<1x32xf32> to vector<16x32xf32>
    %127 = arith.addf %124, %126 : vector<16x32xf32>
    %128 = arith.addf %127, %25 : vector<16x32xf32>
    %c0_36 = arith.constant 0 : index
    %c0_37 = arith.constant 0 : index
    %129 = vector.load %arg12[%c0_36, %c0_37] : memref<1x32xf32, #tpu.memory_space<vmem>>, vector<1x32xf32>
    %c0_38 = arith.constant 0 : index
    %c0_39 = arith.constant 0 : index
    %130 = vector.load %arg13[%c0_38, %c0_39] : memref<1x32xf32, #tpu.memory_space<vmem>>, vector<1x32xf32>
    %cst_40 = arith.constant dense<0.000000e+00> : vector<16xf32>
    %131 = vector.multi_reduction <add>, %128, %cst_40 [1] : vector<16x32xf32> to vector<16xf32>
    %132 = vector.shape_cast %131 : vector<16xf32> to vector<16x1xf32>
    %cst_41 = arith.constant 3.200000e+01 : f32
    %133 = vector.broadcast %cst_41 : f32 to vector<16x1xf32>
    %134 = arith.divf %132, %133 : vector<16x1xf32>
    %135 = vector.broadcast %134 : vector<16x1xf32> to vector<16x32xf32>
    %136 = arith.subf %128, %135 : vector<16x32xf32>
    %137 = arith.mulf %136, %136 : vector<16x32xf32>
    %cst_42 = arith.constant dense<0.000000e+00> : vector<16xf32>
    %138 = vector.multi_reduction <add>, %137, %cst_42 [1] : vector<16x32xf32> to vector<16xf32>
    %139 = vector.shape_cast %138 : vector<16xf32> to vector<16x1xf32>
    %cst_43 = arith.constant 3.200000e+01 : f32
    %140 = vector.broadcast %cst_43 : f32 to vector<16x1xf32>
    %141 = arith.divf %139, %140 : vector<16x1xf32>
    %142 = vector.broadcast %134 : vector<16x1xf32> to vector<16x32xf32>
    %143 = arith.subf %128, %142 : vector<16x32xf32>
    %cst_44 = arith.constant 9.99999996E-13 : f32
    %144 = vector.broadcast %cst_44 : f32 to vector<16x1xf32>
    %145 = arith.addf %141, %144 : vector<16x1xf32>
    %146 = math.rsqrt %145 : vector<16x1xf32>
    %147 = vector.broadcast %146 : vector<16x1xf32> to vector<16x32xf32>
    %148 = arith.mulf %143, %147 : vector<16x32xf32>
    %149 = vector.broadcast %129 : vector<1x32xf32> to vector<16x32xf32>
    %150 = arith.mulf %148, %149 : vector<16x32xf32>
    %151 = vector.broadcast %130 : vector<1x32xf32> to vector<16x32xf32>
    %152 = arith.addf %150, %151 : vector<16x32xf32>
    %153 = arith.truncf %152 : vector<16x32xf32> to vector<16x32xbf16>
    %c0_45 = arith.constant 0 : index
    %c0_46 = arith.constant 0 : index
    %154 = vector.load %arg8[%c0_45, %c0_46] : memref<32x64xbf16, #tpu.memory_space<vmem>>, vector<32x64xbf16>
    %cst_47 = arith.constant dense<0.000000e+00> : vector<16x64xf32>
    %155 = tpu.matmul %153, %154, %cst_47 {dimension_numbers = #tpu.dot_dimension_numbers<[1], [0], [0], [1], [0, 0, 1, 1], [], []>} : vector<16x32xbf16>, vector<32x64xbf16>, vector<16x64xf32> -> vector<16x64xf32>
    %c0_48 = arith.constant 0 : index
    %c0_49 = arith.constant 0 : index
    %156 = vector.load %arg9[%c0_48, %c0_49] : memref<1x64xf32, #tpu.memory_space<vmem>>, vector<1x64xf32>
    %157 = vector.broadcast %156 : vector<1x64xf32> to vector<16x64xf32>
    %158 = arith.addf %155, %157 : vector<16x64xf32>
    %cst_50 = arith.constant 0.000000e+00 : f32
    %159 = vector.broadcast %cst_50 : f32 to vector<16x64xf32>
    %160 = arith.maximumf %158, %159 : vector<16x64xf32>
    %161 = arith.truncf %160 : vector<16x64xf32> to vector<16x64xbf16>
    %c0_51 = arith.constant 0 : index
    %c0_52 = arith.constant 0 : index
    %162 = vector.load %arg10[%c0_51, %c0_52] : memref<64x32xbf16, #tpu.memory_space<vmem>>, vector<64x32xbf16>
    %cst_53 = arith.constant dense<0.000000e+00> : vector<16x32xf32>
    %163 = tpu.matmul %161, %162, %cst_53 {dimension_numbers = #tpu.dot_dimension_numbers<[1], [0], [0], [1], [0, 0, 1, 1], [], []>} : vector<16x64xbf16>, vector<64x32xbf16>, vector<16x32xf32> -> vector<16x32xf32>
    %c0_54 = arith.constant 0 : index
    %c0_55 = arith.constant 0 : index
    %164 = vector.load %arg11[%c0_54, %c0_55] : memref<1x32xf32, #tpu.memory_space<vmem>>, vector<1x32xf32>
    %165 = vector.broadcast %164 : vector<1x32xf32> to vector<16x32xf32>
    %166 = arith.addf %163, %165 : vector<16x32xf32>
    %167 = arith.addf %166, %152 : vector<16x32xf32>
    %168 = vector.shape_cast %167 : vector<16x32xf32> to vector<2x8x32xf32>
    %c0_56 = arith.constant 0 : index
    %c0_57 = arith.constant 0 : index
    %c0_58 = arith.constant 0 : index
    %169 = vector.load %arg14[%c0_56, %c0_57, %c0_58] : memref<2x8x32xf32, #tpu.memory_space<vmem>>, vector<2x8x32xf32>
    tpu.vector_store %arg14[%c0_56, %c0_57, %c0_58], %168 {strides = array<i32>} : memref<2x8x32xf32, #tpu.memory_space<vmem>>, vector<2x8x32xf32>,
    return
  }
  func.func @transform_0(%arg0: i32) -> (i32, i32, i32) {
    %c0_i32 = arith.constant 0 : i32
    %c0_i32_0 = arith.constant 0 : i32
    %c0_i32_1 = arith.constant 0 : i32
    return %arg0, %c0_i32, %c0_i32_0 : i32, i32, i32
  }
  func.func @transform_1(%arg0: i32) -> (i32, i32) {
    %c0_i32 = arith.constant 0 : i32
    %c0_i32_0 = arith.constant 0 : i32
    %c0_i32_1 = arith.constant 0 : i32
    return %c0_i32, %c0_i32_0 : i32, i32
  }
  func.func @transform_2(%arg0: i32) -> (i32, i32) {
    %c0_i32 = arith.constant 0 : i32
    %c0_i32_0 = arith.constant 0 : i32
    %c0_i32_1 = arith.constant 0 : i32
    return %c0_i32, %c0_i32_0 : i32, i32
  }
  func.func @transform_3(%arg0: i32) -> (i32, i32) {
    %c0_i32 = arith.constant 0 : i32
    %c0_i32_0 = arith.constant 0 : i32
    %c0_i32_1 = arith.constant 0 : i32
    return %c0_i32, %c0_i32_0 : i32, i32
  }
  func.func @transform_4(%arg0: i32) -> (i32, i32) {
    %c0_i32 = arith.constant 0 : i32
    %c0_i32_0 = arith.constant 0 : i32
    %c0_i32_1 = arith.constant 0 : i32
    return %c0_i32, %c0_i32_0 : i32, i32
  }
  func.func @transform_5(%arg0: i32) -> (i32, i32) {
    %c0_i32 = arith.constant 0 : i32
    %c0_i32_0 = arith.constant 0 : i32
    %c0_i32_1 = arith.constant 0 : i32
    return %c0_i32, %c0_i32_0 : i32, i32
  }
  func.func @transform_6(%arg0: i32) -> (i32, i32) {
    %c0_i32 = arith.constant 0 : i32
    %c0_i32_0 = arith.constant 0 : i32
    %c0_i32_1 = arith.constant 0 : i32
    return %c0_i32, %c0_i32_0 : i32, i32
  }
  func.func @transform_7(%arg0: i32) -> (i32, i32) {
    %c0_i32 = arith.constant 0 : i32
    %c0_i32_0 = arith.constant 0 : i32
    %c0_i32_1 = arith.constant 0 : i32
    return %c0_i32, %c0_i32_0 : i32, i32
  }
  func.func @transform_8(%arg0: i32) -> (i32, i32) {
    %c0_i32 = arith.constant 0 : i32
    %c0_i32_0 = arith.constant 0 : i32
    %c0_i32_1 = arith.constant 0 : i32
    return %c0_i32, %c0_i32_0 : i32, i32
  }
  func.func @transform_9(%arg0: i32) -> (i32, i32) {
    %c0_i32 = arith.constant 0 : i32
    %c0_i32_0 = arith.constant 0 : i32
    %c0_i32_1 = arith.constant 0 : i32
    return %c0_i32, %c0_i32_0 : i32, i32
  }
  func.func @transform_10(%arg0: i32) -> (i32, i32) {
    %c0_i32 = arith.constant 0 : i32
    %c0_i32_0 = arith.constant 0 : i32
    %c0_i32_1 = arith.constant 0 : i32
    return %c0_i32, %c0_i32_0 : i32, i32
  }
  func.func @transform_11(%arg0: i32) -> (i32, i32) {
    %c0_i32 = arith.constant 0 : i32
    %c0_i32_0 = arith.constant 0 : i32
    %c0_i32_1 = arith.constant 0 : i32
    return %c0_i32, %c0_i32_0 : i32, i32
  }
  func.func @transform_12(%arg0: i32) -> (i32, i32) {
    %c0_i32 = arith.constant 0 : i32
    %c0_i32_0 = arith.constant 0 : i32
    %c0_i32_1 = arith.constant 0 : i32
    return %c0_i32, %c0_i32_0 : i32, i32
  }
  func.func @transform_13(%arg0: i32) -> (i32, i32, i32) {
    %c0_i32 = arith.constant 0 : i32
    %c0_i32_0 = arith.constant 0 : i32
    %c0_i32_1 = arith.constant 0 : i32
    return %arg0, %c0_i32, %c0_i32_0 : i32, i32, i32
  }
}

</mosaic_0001>

<bundles_post_ra>
// kernel: tpu_custom_call.1
= control target key start
LH: loop header
LB: loop body
LE: loop exit
PB: predicated region body
PF: predicated region fallthrough
CT: control target
= control target key end

     0   :  { %18 = vsyncpa [#allocation3], 0  ;;  %s2654_s0 = inlined_call_operand.hbm [shape: f32[2,8,32], index: 0, kind: input, shape index: {}]   ;;  %s2655_s1 = inlined_call_operand.hbm [shape: f32[1,32], index: 1, kind: input, shape index: {}]   ;;  %s2656_s2 = inlined_call_operand.hbm [shape: f32[1,32], index: 2, kind: input, shape index: {}]   ;;  %s2657_s3 = inlined_call_operand.hbm [shape: bf16[32,96], index: 3, kind: input, shape index: {}]   ;;  %s2658_s4 = inlined_call_operand.hbm [shape: f32[1,96], index: 4, kind: input, shape index: {}]   ;;  %s2659_s5 = inlined_call_operand.hbm [shape: bf16[32,32], index: 5, kind: input, shape index: {}]   ;;  %s2660_s6 = inlined_call_operand.hbm [shape: f32[1,32], index: 6, kind: input, shape index: {}]   ;;  %s2661_s7 = inlined_call_operand.hbm [shape: bf16[32,64], index: 7, kind: input, shape index: {}]   ;;  %s2662_s8 = inlined_call_operand.hbm [shape: f32[1,64], index: 8, kind: input, shape index: {}]   ;;  %s2663_s9 = inlined_call_operand.hbm [shape: bf16[64,32], index: 9, kind: input, shape index: {}]   ;;  %s2664_s10 = inlined_call_operand.hbm [shape: f32[1,32], index: 10, kind: input, shape index: {}]   ;;  %s2665_s11 = inlined_call_operand.hbm [shape: f32[1,32], index: 11, kind: input, shape index: {}]   ;;  %s2666_s12 = inlined_call_operand.hbm [shape: f32[1,32], index: 12, kind: input, shape index: {}]   ;;  %s2667_s13 = inlined_call_operand.hbm [shape: f32[2,8,32], index: 13, kind: output, shape index: {}]  }
   0x1   :  { %19 = vsyncpa [#allocation6], 0 }
   0x2   :  { %20 = vsyncpa [#allocation9], 0 }
   0x3   :  { %21 = vsyncpa [#allocation12], 0 }
   0x4   :  { %22 = vsyncpa [#allocation15], 0 }
   0x5   :  { %23 = vsyncpa [#allocation18], 0 }
   0x6   :  { %24 = vsyncpa [#allocation21], 0 }
   0x7   :  { %25 = vsyncpa [#allocation4], 0  ;;  %s2169_s25 = smov [#allocation5]   ;;  %s2170_s27 = smov [#allocation8]  }
   0x8   :  { %s44_s26 = sshll.u32 %s2169_s25, 4  ;;  %s63_s28 = sshll.u32 %s2170_s27, 4  ;;  %s45_s26 = int_to_ptr.vmem [resolvable:$true] %s44_s26  ;;  %s2271_s28 = int_to_ptr.vmem [resolvable:$true] %s63_s28 }
   0x9   :  { %s1845_s14 = scalar_lea.hbm %s2655_s1, 16 }
   0xa   :  { %p1846_p0 = scmp.ne.s32.totalorder %s2655_s1, %s1845_s14  ;;  %p1849_p1 = scmp.lt.u32.totalorder %s1845_s14, %s2655_s1 }
   0xc   :  { %p1851_p2 = pnand %p1849_p1, %p1846_p0 }
   0xe   :  { %1854 = shalt.err (!%p1851_p2)
}
   0xf   :  { %s1855_s19 = scalar_lea.vmem %s45_s26, 16  ;;  %s1859_s20 = scalar_lea.vmem %s45_s26, 32 }
  0x10   :  { %p1856_p3 = scmp.ne.s32.totalorder %s45_s26, %s1855_s19  ;;  %p1860_p4 = scmp.lt.s32.totalorder %s45_s26, %s45_s26 }
  0x11   :  { %p1861_p5 = scmp.lt.s32.totalorder %s1859_s20, %s1855_s19 }
  0x13   :  { %p1862_p6 = por %p1861_p5, %p1860_p4 }
  0x15   :  { %p1863_p7 = pnand %p1862_p6, %p1856_p3 }
  0x17   :  { %1866 = shalt.err (!%p1863_p7)
}
  0x18   :  { %47 = dma.hbm_to_vmem [thread:$0]  %s2655_s1, 16, %s45_s26, [#allocation6]  }
  0x19   :  { %s1867_s25 = scalar_lea.hbm %s2657_s3, 256 }
  0x1a   :  { %p1868_p8 = scmp.ne.s32.totalorder %s2657_s3, %s1867_s25  ;;  %p1871_p9 = scmp.lt.u32.totalorder %s1867_s25, %s2657_s3 }
  0x1c   :  { %p1873_p10 = pnand %p1871_p9, %p1868_p8 }
  0x1e   :  { %1876 = shalt.err (!%p1873_p10)
}
  0x1f   :  { %s1877_s15 = scalar_lea.vmem %s2271_s28, 256  ;;  %p1882_p12 = scmp.lt.s32.totalorder %s2271_s28, %s2271_s28 }
  0x20   :  { %p1878_p11 = scmp.ne.s32.totalorder %s2271_s28, %s1877_s15  ;;  %p1883_p13 = scmp.lt.s32.totalorder %s1877_s15, %s1877_s15 }
  0x22   :  { %p1884_p0 = por %p1883_p13, %p1882_p12 }
  0x24   :  { %p1885_p1 = pnand %p1884_p0, %p1878_p11 }
  0x26   :  { %1888 = shalt.err (!%p1885_p1)
}
  0x27   :  { %s2171_s1 = smov 64   ;;  %s2172_s26 = smov 4  }
  0x28   :  { %69 = dma.hbm_to_vmem [thread:$0]  %s2657_s3, 256, %s2271_s28, [#allocation9], %s2171_s1, %s2171_s1, %s2172_s26  }
  0x29   :  { %s2173_s18 = smov [#allocation11]   ;;  %s2174_s20 = smov [#allocation14]  }
  0x2a   :  { %s85_s19 = sshll.u32 %s2173_s18, 4  ;;  %s107_s21 = sshll.u32 %s2174_s20, 4  ;;  %s86_s19 = int_to_ptr.vmem [resolvable:$true] %s85_s19  ;;  %s2305_s21 = int_to_ptr.vmem [resolvable:$true] %s107_s21 }
  0x2b   :  { %s1889_s24 = scalar_lea.hbm %s2659_s5, 256 }
  0x2c   :  { %p1890_p2 = scmp.ne.s32.totalorder %s2659_s5, %s1889_s24  ;;  %p1893_p3 = scmp.lt.u32.totalorder %s1889_s24, %s2659_s5 }
  0x2e   :  { %p1895_p4 = pnand %p1893_p3, %p1890_p2 }
  0x30   :  { %1898 = shalt.err (!%p1895_p4)
}
  0x31   :  { %s1899_s3 = scalar_lea.vmem %s86_s19, 256  ;;  %p1904_p6 = scmp.lt.s32.totalorder %s86_s19, %s86_s19 }
  0x32   :  { %p1900_p5 = scmp.ne.s32.totalorder %s86_s19, %s1899_s3  ;;  %p1905_p7 = scmp.lt.s32.totalorder %s1899_s3, %s1899_s3 }
  0x34   :  { %p1906_p8 = por %p1905_p7, %p1904_p6 }
  0x36   :  { %p1907_p9 = pnand %p1906_p8, %p1900_p5 }
  0x38   :  { %1910 = shalt.err (!%p1907_p9)
}
  0x39   :  { %91 = dma.hbm_to_vmem [thread:$0]  %s2659_s5, 256, %s86_s19, [#allocation12], %s2171_s1, %s2171_s1, %s2172_s26  }
  0x3a   :  { %s1911_s17 = scalar_lea.hbm %s2661_s7, 256 }
  0x3b   :  { %p1912_p10 = scmp.ne.s32.totalorder %s2661_s7, %s1911_s17  ;;  %p1915_p11 = scmp.lt.u32.totalorder %s1911_s17, %s2661_s7 }
  0x3d   :  { %p1917_p12 = pnand %p1915_p11, %p1912_p10 }
  0x3f   :  { %1920 = shalt.err (!%p1917_p12)
}
  0x40   :  { %s1921_s24 = scalar_lea.vmem %s2305_s21, 256  ;;  %p1926_p0 = scmp.lt.s32.totalorder %s2305_s21, %s2305_s21 }
  0x41   :  { %p1922_p13 = scmp.ne.s32.totalorder %s2305_s21, %s1921_s24  ;;  %p1927_p1 = scmp.lt.s32.totalorder %s1921_s24, %s1921_s24 }
  0x43   :  { %p1928_p2 = por %p1927_p1, %p1926_p0 }
  0x45   :  { %p1929_p3 = pnand %p1928_p2, %p1922_p13 }
  0x47   :  { %1932 = shalt.err (!%p1929_p3)
}
  0x48   :  { %113 = dma.hbm_to_vmem [thread:$0]  %s2661_s7, 256, %s2305_s21, [#allocation15], %s2171_s1, %s2171_s1, %s2172_s26  }
  0x49   :  { %s2175_s25 = smov [#allocation17]   ;;  %s2176_s29 = smov [#allocation20]  }
  0x4a   :  { %s129_s27 = sshll.u32 %s2175_s25, 4  ;;  %s152_s30 = sshll.u32 %s2176_s29, 4  ;;  %s130_s27 = int_to_ptr.vmem [resolvable:$true] %s129_s27  ;;  %s153_s30 = int_to_ptr.vmem [resolvable:$true] %s152_s30 }
  0x4b   :  { %s1933_s14 = scalar_lea.hbm %s2663_s9, 512 }
  0x4c   :  { %p1934_p4 = scmp.ne.s32.totalorder %s2663_s9, %s1933_s14  ;;  %p1937_p5 = scmp.lt.u32.totalorder %s1933_s14, %s2663_s9 }
  0x4e   :  { %p1939_p6 = pnand %p1937_p5, %p1934_p4 }
  0x50   :  { %1942 = shalt.err (!%p1939_p6)
}
  0x51   :  { %s1943_s7 = scalar_lea.vmem %s130_s27, 512  ;;  %p1948_p8 = scmp.lt.s32.totalorder %s130_s27, %s130_s27 }
  0x52   :  { %p1944_p7 = scmp.ne.s32.totalorder %s130_s27, %s1943_s7  ;;  %p1949_p9 = scmp.lt.s32.totalorder %s1943_s7, %s1943_s7 }
  0x54   :  { %p1950_p10 = por %p1949_p9, %p1948_p8 }
  0x56   :  { %p1951_p11 = pnand %p1950_p10, %p1944_p7 }
  0x58   :  { %1954 = shalt.err (!%p1951_p11)
}
  0x59   :  { %135 = dma.hbm_to_vmem [thread:$0]  %s2663_s9, 512, %s130_s27, [#allocation18], %s2171_s1, %s2171_s1, %s2172_s26  }
  0x5a   :  { %s1955_s24 = scalar_lea.hbm %s2665_s11, 16 }
  0x5b   :  { %p1956_p12 = scmp.ne.s32.totalorder %s2665_s11, %s1955_s24  ;;  %p1959_p13 = scmp.lt.u32.totalorder %s1955_s24, %s2665_s11 }
  0x5d   :  { %p1961_p0 = pnand %p1959_p13, %p1956_p12 }
  0x5f   :  { %1964 = shalt.err (!%p1961_p0)
}
  0x60   :  { %s1965_s3 = scalar_lea.vmem %s153_s30, 16  ;;  %s1969_s28 = scalar_lea.vmem %s153_s30, 32 }
  0x61   :  { %p1966_p1 = scmp.ne.s32.totalorder %s153_s30, %s1965_s3  ;;  %p1970_p2 = scmp.lt.s32.totalorder %s153_s30, %s153_s30 }
  0x62   :  { %p1971_p3 = scmp.lt.s32.totalorder %s1969_s28, %s1965_s3 }
  0x64   :  { %p1972_p4 = por %p1971_p3, %p1970_p2 }
  0x66   :  { %p1973_p5 = pnand %p1972_p4, %p1966_p1 }
  0x68   :  { %1976 = shalt.err (!%p1973_p5)
}
  0x69   :  { %155 = dma.hbm_to_vmem [thread:$0]  %s2665_s11, 16, %s153_s30, [#allocation21]  }
  0x6a   :  { %s2177_s27 = smov [#allocation2]   ;;  %s1977_s17 = scalar_lea.hbm %s2654_s0, 256 }
  0x6b   :  { %s31_s14 = sshll.u32 %s2177_s27, 4  ;;  %p1978_p6 = scmp.ne.s32.totalorder %s2654_s0, %s1977_s17  ;;  %s32_s14 = int_to_ptr.vmem [resolvable:$true] %s31_s14 }
  0x6c   :  { %p1981_p7 = scmp.lt.u32.totalorder %s1977_s17, %s2654_s0 }
  0x6e   :  { %p1983_p8 = pnand %p1981_p7, %p1978_p6 }
  0x70   :  { %1986 = shalt.err (!%p1983_p8)
}
  0x71   :  { %s1987_s22 = scalar_lea.vmem %s32_s14, 256  ;;  %p1992_p10 = scmp.lt.s32.totalorder %s32_s14, %s32_s14 }
  0x72   :  { %p1988_p9 = scmp.ne.s32.totalorder %s32_s14, %s1987_s22  ;;  %p1993_p11 = scmp.lt.s32.totalorder %s1987_s22, %s1987_s22 }
  0x74   :  { %p1994_p12 = por %p1993_p11, %p1992_p10 }
  0x76   :  { %p1995_p13 = pnand %p1994_p12, %p1988_p9 }
  0x78   :  { %1998 = shalt.err (!%p1995_p13)
}
  0x79   :  { %s2178_s11 = smov 128   ;;  %s2179_s30 = smov 8  }
  0x7a   :  { %37 = dma.hbm_to_vmem [thread:$0]  %s2654_s0, 256, %s32_s14, [#allocation3], %s2178_s11, %s2178_s11, %s2179_s30  }
  0x7b   :  { %s2180_s5 = smov [#allocation7]   ;;  %s2181_s25 = smov [#allocation10]  }
  0x7c   :  { %s54_s19 = sshll.u32 %s2180_s5, 4  ;;  %s76_s29 = sshll.u32 %s2181_s25, 4  ;;  %s55_s19 = int_to_ptr.vmem [resolvable:$true] %s54_s19  ;;  %s77_s29 = int_to_ptr.vmem [resolvable:$true] %s76_s29 }
  0x7d   :  { %s1999_s9 = scalar_lea.hbm %s2656_s2, 16 }
  0x7e   :  { %p2000_p0 = scmp.ne.s32.totalorder %s2656_s2, %s1999_s9  ;;  %p2003_p1 = scmp.lt.u32.totalorder %s1999_s9, %s2656_s2 }
  0x80   :  { %p2005_p2 = pnand %p2003_p1, %p2000_p0 }
  0x82   :  { %2008 = shalt.err (!%p2005_p2)
}
  0x83   :  { %s2009_s0 = scalar_lea.vmem %s55_s19, 16  ;;  %s2013_s14 = scalar_lea.vmem %s55_s19, 32 }
  0x84   :  { %p2010_p3 = scmp.ne.s32.totalorder %s55_s19, %s2009_s0  ;;  %p2014_p4 = scmp.lt.s32.totalorder %s55_s19, %s55_s19 }
  0x85   :  { %p2015_p5 = scmp.lt.s32.totalorder %s2013_s14, %s2009_s0 }
  0x87   :  { %p2016_p6 = por %p2015_p5, %p2014_p4 }
  0x89   :  { %p2017_p7 = pnand %p2016_p6, %p2010_p3 }
  0x8b   :  { %2020 = shalt.err (!%p2017_p7)
}
  0x8c   :  { %57 = dma.hbm_to_vmem [thread:$0]  %s2656_s2, 16, %s55_s19, [#allocation6]  }
  0x8d   :  { %s2021_s20 = scalar_lea.hbm %s2658_s4, 16 }
  0x8e   :  { %p2022_p8 = scmp.ne.s32.totalorder %s2658_s4, %s2021_s20  ;;  %p2025_p9 = scmp.lt.u32.totalorder %s2021_s20, %s2658_s4 }
  0x90   :  { %p2027_p10 = pnand %p2025_p9, %p2022_p8 }
  0x92   :  { %2030 = shalt.err (!%p2027_p10)
}
  0x93   :  { %s2031_s25 = scalar_lea.vmem %s77_s29, 16  ;;  %s2035_s3 = scalar_lea.vmem %s77_s29, 32 }
  0x94   :  { %p2032_p11 = scmp.ne.s32.totalorder %s77_s29, %s2031_s25  ;;  %p2036_p12 = scmp.lt.s32.totalorder %s77_s29, %s77_s29 }
  0x95   :  { %p2037_p13 = scmp.lt.s32.totalorder %s2035_s3, %s2031_s25 }
  0x97   :  { %p2038_p0 = por %p2037_p13, %p2036_p12 }
  0x99   :  { %p2039_p1 = pnand %p2038_p0, %p2032_p11 }
  0x9b   :  { %2042 = shalt.err (!%p2039_p1)
}
  0x9c   :  { %79 = dma.hbm_to_vmem [thread:$0]  %s2658_s4, 16, %s77_s29, [#allocation9]  }
  0x9d   :  { %s2182_s28 = smov [#allocation13]   ;;  %s2183_s26 = smov [#allocation16]  }
  0x9e   :  { %s98_s9 = sshll.u32 %s2182_s28, 4  ;;  %s120_s27 = sshll.u32 %s2183_s26, 4  ;;  %s99_s9 = int_to_ptr.vmem [resolvable:$true] %s98_s9  ;;  %s121_s27 = int_to_ptr.vmem [resolvable:$true] %s120_s27 }
  0x9f   :  { %s2043_s0 = scalar_lea.hbm %s2660_s6, 16 }
  0xa0   :  { %p2044_p2 = scmp.ne.s32.totalorder %s2660_s6, %s2043_s0  ;;  %p2047_p3 = scmp.lt.u32.totalorder %s2043_s0, %s2660_s6 }
  0xa2   :  { %p2049_p4 = pnand %p2047_p3, %p2044_p2 }
  0xa4   :  { %2052 = shalt.err (!%p2049_p4)
}
  0xa5   :  { %s2053_s4 = scalar_lea.vmem %s99_s9, 16  ;;  %s2057_s29 = scalar_lea.vmem %s99_s9, 32 }
  0xa6   :  { %p2054_p5 = scmp.ne.s32.totalorder %s99_s9, %s2053_s4  ;;  %p2058_p6 = scmp.lt.s32.totalorder %s99_s9, %s99_s9 }
  0xa7   :  { %p2059_p7 = scmp.lt.s32.totalorder %s2057_s29, %s2053_s4 }
  0xa9   :  { %p2060_p8 = por %p2059_p7, %p2058_p6 }
  0xab   :  { %p2061_p9 = pnand %p2060_p8, %p2054_p5 }
  0xad   :  { %2064 = shalt.err (!%p2061_p9)
}
  0xae   :  { %101 = dma.hbm_to_vmem [thread:$0]  %s2660_s6, 16, %s99_s9, [#allocation12]  }
  0xaf   :  { %s2065_s24 = scalar_lea.hbm %s2662_s8, 16 }
  0xb0   :  { %p2066_p10 = scmp.ne.s32.totalorder %s2662_s8, %s2065_s24  ;;  %p2069_p11 = scmp.lt.u32.totalorder %s2065_s24, %s2662_s8 }
  0xb2   :  { %p2071_p12 = pnand %p2069_p11, %p2066_p10 }
  0xb4   :  { %2074 = shalt.err (!%p2071_p12)
}
  0xb5   :  { %s2075_s19 = scalar_lea.vmem %s121_s27, 16  ;;  %s2079_s28 = scalar_lea.vmem %s121_s27, 32 }
  0xb6   :  { %p2076_p13 = scmp.ne.s32.totalorder %s121_s27, %s2075_s19  ;;  %p2080_p0 = scmp.lt.s32.totalorder %s121_s27, %s121_s27 }
  0xb7   :  { %p2081_p1 = scmp.lt.s32.totalorder %s2079_s28, %s2075_s19 }
  0xb9   :  { %p2082_p2 = por %p2081_p1, %p2080_p0 }
  0xbb   :  { %p2083_p3 = pnand %p2082_p2, %p2076_p13 }
  0xbd   :  { %2086 = shalt.err (!%p2083_p3)
}
  0xbe   :  { %123 = dma.hbm_to_vmem [thread:$0]  %s2662_s8, 16, %s121_s27, [#allocation15]  }
  0xbf   :  { %s2184_s26 = smov [#allocation19]   ;;  %s2185_s16 = smov [#allocation22]  }
  0xc0   :  { %s142_s15 = sshll.u32 %s2184_s26, 4  ;;  %s162_s0 = sshll.u32 %s2185_s16, 4  ;;  %s143_s15 = int_to_ptr.vmem [resolvable:$true] %s142_s15  ;;  %s163_s0 = int_to_ptr.vmem [resolvable:$true] %s162_s0 }
  0xc1   :  { %s2087_s18 = scalar_lea.hbm %s2664_s10, 16 }
  0xc2   :  { %p2088_p4 = scmp.ne.s32.totalorder %s2664_s10, %s2087_s18  ;;  %p2091_p5 = scmp.lt.u32.totalorder %s2087_s18, %s2664_s10 }
  0xc4   :  { %p2093_p6 = pnand %p2091_p5, %p2088_p4 }
  0xc6   :  { %2096 = shalt.err (!%p2093_p6)
}
  0xc7   :  { %s2097_s8 = scalar_lea.vmem %s143_s15, 16  ;;  %s2101_s27 = scalar_lea.vmem %s143_s15, 32 }
  0xc8   :  { %p2098_p7 = scmp.ne.s32.totalorder %s143_s15, %s2097_s8  ;;  %p2102_p8 = scmp.lt.s32.totalorder %s143_s15, %s143_s15 }
  0xc9   :  { %p2103_p9 = scmp.lt.s32.totalorder %s2101_s27, %s2097_s8 }
  0xcb   :  { %p2104_p10 = por %p2103_p9, %p2102_p8 }
  0xcd   :  { %p2105_p11 = pnand %p2104_p10, %p2098_p7 }
  0xcf   :  { %2108 = shalt.err (!%p2105_p11)
}
  0xd0   :  { %145 = dma.hbm_to_vmem [thread:$0]  %s2664_s10, 16, %s143_s15, [#allocation18]  }
  0xd1   :  { %s2109_s5 = scalar_lea.hbm %s2666_s12, 16 }
  0xd2   :  { %p2110_p12 = scmp.ne.s32.totalorder %s2666_s12, %s2109_s5  ;;  %p2113_p13 = scmp.lt.u32.totalorder %s2109_s5, %s2666_s12 }
  0xd4   :  { %p2115_p0 = pnand %p2113_p13, %p2110_p12 }
  0xd6   :  { %2118 = shalt.err (!%p2115_p0)
}
  0xd7   :  { %s2119_s28 = scalar_lea.vmem %s163_s0, 16  ;;  %s2123_s6 = scalar_lea.vmem %s163_s0, 32 }
  0xd8   :  { %p2120_p1 = scmp.ne.s32.totalorder %s163_s0, %s2119_s28  ;;  %p2124_p2 = scmp.lt.s32.totalorder %s163_s0, %s163_s0 }
  0xd9   :  { %p2125_p3 = scmp.lt.s32.totalorder %s2123_s6, %s2119_s28 }
  0xdb   :  { %p2126_p4 = por %p2125_p3, %p2124_p2 }
  0xdd   :  { %p2127_p5 = pnand %p2126_p4, %p2120_p1 }
  0xdf   :  { %2130 = shalt.err (!%p2127_p5)
}
  0xe0   :  { %165 = dma.hbm_to_vmem [thread:$0]  %s2666_s12, 16, %s163_s0, [#allocation21]  }
  0xe1   :  { %2153 = dma.done.wait [#allocation3], 256  }
  0xe2   :  { %2154 = vsyncadd [#allocation3], 4294967040 }
  0xe3   :  { %2155 = dma.done.wait [#allocation6], 32  }
  0xe4   :  { %2156 = vsyncadd [#allocation6], 4294967264 }
  0xe5   :  { %2157 = dma.done.wait [#allocation9], 272  }
  0xe6   :  { %2158 = vsyncadd [#allocation9], 4294967024 }
  0xe7   :  { %2159 = dma.done.wait [#allocation12], 272  }
  0xe8   :  { %2160 = vsyncadd [#allocation12], 4294967024 }
  0xe9   :  { %2161 = dma.done.wait [#allocation15], 272  }
  0xea   :  { %2162 = vsyncadd [#allocation15], 4294967024 }
  0xeb   :  { %2163 = dma.done.wait [#allocation18], 528  }
  0xec   :  { %2164 = vsyncadd [#allocation18], 4294966768 }
  0xed   :  { %2165 = dma.done.wait [#allocation21], 32  }
  0xee   :  { %2166 = vsyncadd [#allocation21], 4294967264  ;;  %vm210_vm0 = vcmask 261120   ;;  %v206_v0 = vld [vmem:[#allocation2] sm:$0xff]  ;;  %v207_v1 = vld [vmem:[#allocation2 + $0x8] sm:$0xff]  ;;  %v2186_v15 = vmov 0.0  }
  0xef   :  { %v211_v2 = vsel %vm210_vm0, %v206_v0, 0.0  ;;  %v214_v3 = vsel %vm210_vm0, %v207_v1, 0.0  ;;  %v1795_v14 = vld [vmem:[#allocation8] sm:$0xff]   ;;  %1616 = vmatprep.subr.bf16.mxu0 %v2186_v15  ;;  %1624 = vmatprep.subr.bf16.mxu1 %v2186_v15  ;;  %v1796_v16 = vld [vmem:[#allocation8 + $0x8] sm:$0xff]   ;;  %vm2187_vm1 = vmmov 0   ;;  %s2188_s12 = smov 96  }
  0xf0   :  { %212 = vadd.xlane.f32.xlu0 %v211_v2  ;;  %1617 = vmatpush3.bf16.msra.mxu0 %v1795_v14  ;;  %v1532_v25 = vld [vmem:[#allocation5] ss:$0 sm:$0xff]  ;;  %v1533_v29 = vld [vmem:[#allocation7] ss:$0 sm:$0xff]  ;;  %v1534_v34 = vld [vmem:[#allocation10] ss:$0 sm:$0xff] }
  0xf1   :  { %1620 = vmatprep.mubr.msk.bf16.mxu0 %vm2187_vm1, %v2186_v15  ;;  %1618 = vmatprep.subr.bf16.mxu0 %v2186_v15  ;;  %vm327_vm2 = vcmask 64512   ;;  %s2189_s26 = smov 88   ;;  %vm452_vm3 = vcmask 1043456   ;;  %s2190_s15 = smov 120   ;;  %vm1230_vm4 = vcmask 130048   ;;  %vm1233_vm5 = vcmask 195584  }
  0xf2   :  { %1626 = vmatprep.mubr.msk.bf16.mxu1 %vm2187_vm1, %v2186_v15  ;;  %s2192_s16 = smov 80   ;;  %s2193_s0 = smov 112   ;;  %vm1460_vm6 = vcmask 523264  }
  0xf3   :  { %s2194_s14 = smov 48   ;;  %s2195_s17 = smov 72  }
  0xf4   :  { %215 = vadd.xlane.f32.xlu0 %v214_v3  ;;  %1619 = vmatpush3.bf16.msra.mxu0 %v1796_v16  ;;  %s2196_s18 = smov 104   ;;  %s2197_s7 = smov 40  }
  0xf5   :  { %1630 = vmatprep.subr.bf16.mxu0 %v2186_v15  ;;  %s2198_s4 = smov 16   ;;  %s2199_s29 = smov 24  }
  0xf6   :  { %s2200_s21 = smov [#allocation23]  }
  0xf7   :  { %s1514_s8 = sshll.u32 %s2200_s21, 4  ;;  %s1515_s8 = int_to_ptr.vmem [resolvable:$true] %s1514_s8 }
  0xf8   :  { %s2131_s27 = scalar_lea.vmem %s1515_s8, 256  ;;  %p2136_p7 = scmp.lt.s32.totalorder %s1515_s8, %s1515_s8 }
  0xf9   :  { %p2132_p6 = scmp.ne.s32.totalorder %s1515_s8, %s2131_s27  ;;  %p2137_p8 = scmp.lt.s32.totalorder %s2131_s27, %s2131_s27 }
  0xfb   :  { %p2138_p9 = por %p2137_p8, %p2136_p7 }
  0xfd   :  { %p2139_p10 = pnand %p2138_p9, %p2132_p6 }
 0x17d   :  { %v213_v4 = vpop.xlane.xlu0 %212 }
 0x17e   :  { %v218_v5 = vmul.f32 0.03125, %v213_v4 }
 0x180   :  { %v220_v6 = vsub.f32 %v206_v0, %v218_v5 }
 0x181   :  { %v216_v7 = vpop.xlane.xlu0 %215 }
 0x182   :  { %v219_v8 = vmul.f32 0.03125, %v216_v7  ;;  %v222_v9 = vmul.f32 %v220_v6, %v220_v6 }
 0x184   :  { %v221_v10 = vsub.f32 %v207_v1, %v219_v8  ;;  %v224_v11 = vsel %vm210_vm0, %v222_v9, 0.0 }
 0x185   :  { %225 = vadd.xlane.f32.xlu1 %v224_v11 }
 0x186   :  { %v223_v12 = vmul.f32 %v221_v10, %v221_v10 }
 0x188   :  { %v227_v13 = vsel %vm210_vm0, %v223_v12, 0.0 }
 0x189   :  { %228 = vadd.xlane.f32.xlu1 %v227_v13 }
 0x212   :  { %v226_v17 = vpop.xlane.xlu1 %225 }
 0x213   :  { %v230_v18 = vmul.f32 0.03125, %v226_v17 }
 0x215   :  { %v232_v19 = vadd.f32 1e-12, %v230_v18 }
 0x216   :  { %v229_v20 = vpop.xlane.xlu1 %228 }
 0x217   :  { %1805 = vrsqrt.f32 %v232_v19  ;;  %v231_v21 = vmul.f32 0.03125, %v229_v20 }
 0x219   :  { %v233_v22 = vadd.f32 1e-12, %v231_v21 }
 0x21b   :  { %1807 = vrsqrt.f32 %v233_v22 }
 0x221   :  { %v1806_v23 = vpop.eup %1805 }
 0x222   :  { %v236_v24 = vmul.f32 %v1806_v23, %v220_v6 }
 0x224   :  { %v244_v28 = vmul.f32 %v1532_v25, %v236_v24 }
 0x225   :  { %v1808_v26 = vpop.eup %1807 }
 0x226   :  { %v237_v27 = vmul.f32 %v1808_v26, %v221_v10  ;;  %v2468_v31 = vadd.f32 %v1533_v29, %v244_v28 }
 0x228   :  { %v245_v30 = vmul.f32 %v1532_v25, %v237_v27 }
 0x22a   :  { %v2470_v32 = vadd.f32 %v1533_v29, %v245_v30 }
 0x22c   :  { %v254_v33 = vpack.c.bf16 %v2470_v32, %v2468_v31 }
 0x22e   :  { %1621 = vmatmul.mubr.msk.bf16.vlgmr.msra.gmra.mrb[0].mxu0 %vm210_vm0, %v254_v33 }
 0x22f   :  { %1632 = vmatprep.mubr.msk.bf16.mxu0 %vm2187_vm1, %v2186_v15 }
 0x301   :  { %v315_v35 = vpop.f32.mrb[0].mxu0 }
 0x302   :  { %v316_v36 = vadd.f32 %v1534_v34, %v315_v35  ;;  %v1622_v37 = vpop.f32.mrb[1].mxu0 }
 0x303   :  { %v318_v38 = vpop.f32.mrb[2].mxu0 }
 0x304   :  { %v2477_v39 = vpack.c.bf16 %v316_v36, %v316_v36  ;;  %v319_v40 = vadd.f32 %v1534_v34, %v318_v38  ;;  %v1623_v41 = vpop.f32.mrb[3].mxu0 }
 0x306   :  { %v2479_v42 = vpack.c.bf16 %v319_v40, %v319_v40  ;;  %325 = vrot.lane.b32.xlu0 %v2477_v39, %s2188_s12 }
 0x308   :  { %375 = vrot.lane.b32.xlu1 %v2479_v42, %s2188_s12 }
 0x378   :  { %v326_v43 = vpop.permute.xlu0 %325 }
 0x379   :  { %v332_v44 = vsel %vm327_vm2, %v326_v43, 0 }
 0x37a   :  { %1625 = vmatpush3.bf16.xpose.msra.mxu1 %v332_v44  ;;  %v376_v45 = vpop.permute.xlu1 %375 }
 0x37b   :  { %v381_v46 = vsel %vm327_vm2, %v376_v45, 0  ;;  %1636 = vmatprep.subr.bf16.mxu1 %v2186_v15 }
 0x37c   :  { %1631 = vmatpush3.bf16.xpose.msra.mxu0 %v381_v46 }
 0x37d   :  { %1642 = vmatprep.subr.bf16.mxu0 %v2186_v15 }
 0x381   :  { %1627 = vmatmul.mubr.msk.bf16.vlgmr.msra.gmra.mrb[0].mxu1 %vm327_vm2, %v2477_v39 }
 0x382   :  { %1638 = vmatprep.mubr.msk.bf16.mxu1 %vm2187_vm1, %v2186_v15 }
 0x383   :  { %1633 = vmatmul.mubr.msk.bf16.vlgmr.msra.gmra.mrb[4].mxu0 %vm327_vm2, %v2479_v42 }
 0x384   :  { %1644 = vmatprep.mubr.msk.bf16.mxu0 %vm2187_vm1, %v2186_v15 }
 0x454   :  { %v368_v47 = vpop.f32.mrb[0].mxu1 }
 0x455   :  { %v1628_v48 = vpop.f32.mrb[1].mxu1  ;;  %v423_v49 = vsel %vm327_vm2, %v368_v47, -inf }
 0x456   :  { %v371_v50 = vpop.f32.mrb[2].mxu1  ;;  %424 = vmax.xlane.f32.xlu1 %v423_v49  ;;  %v417_v51 = vpop.f32.mrb[4].mxu0 }
 0x457   :  { %v1629_v52 = vpop.f32.mrb[3].mxu1  ;;  %v1634_v53 = vpop.f32.mrb[5].mxu0  ;;  %v426_v54 = vsel %vm327_vm2, %v417_v51, -inf }
 0x458   :  { %427 = vmax.xlane.f32.xlu0 %v426_v54  ;;  %v420_v55 = vpop.f32.mrb[6].mxu0 }
 0x459   :  { %v1635_v56 = vpop.f32.mrb[7].mxu0 }
 0x467   :  { %496 = vrot.lane.b32.xlu1 %v2479_v42, %s2171_s1 }
 0x46b   :  { %546 = vrot.lane.b32.xlu1 %v2477_v39, %s2189_s26 }
 0x4e3   :  { %v425_v57 = vpop.xlane.xlu1 %424 }
 0x4e4   :  { %v429_v58 = vsub.f32 %v368_v47, %v425_v57 }
 0x4e5   :  { %v428_v59 = vpop.xlane.xlu0 %427 }
 0x4e6   :  { %v431_v60 = vmul.f32 1.442695, %v429_v58  ;;  %v430_v61 = vsub.f32 %v417_v51, %v428_v59 }
 0x4e7   :  { %v497_v62 = vpop.permute.xlu1 %496 }
 0x4e8   :  { %1809 = vpow2.f32 %v431_v60  ;;  %v433_v63 = vmul.f32 1.442695, %v430_v61  ;;  %v502_v0 = vsel %vm452_vm3, %v497_v62, 0 }
 0x4e9   :  { %1643 = vmatpush3.bf16.msra.mxu0 %v502_v0 }
 0x4ea   :  { %1811 = vpow2.f32 %v433_v63  ;;  %1654 = vmatprep.subr.bf16.mxu0 %v2186_v15 }
 0x4eb   :  { %v547_v5 = vpop.permute.xlu1 %546 }
 0x4ec   :  { %v552_v17 = vsel %vm327_vm2, %v547_v5, 0 }
 0x4f2   :  { %v1810_v1 = vpop.eup %1809 }
 0x4f3   :  { %v435_v2 = vsel %vm327_vm2, %v1810_v1, 0.0 }
 0x4f4   :  { %v1812_v3 = vpop.eup %1811  ;;  %436 = vadd.xlane.f32.xlu0 %v435_v2 }
 0x4f5   :  { %v438_v4 = vsel %vm327_vm2, %v1812_v3, 0.0 }
 0x4f6   :  { %439 = vadd.xlane.f32.xlu1 %v438_v4 }
 0x507   :  { %596 = vrot.lane.b32.xlu1 %v2479_v42, %s2189_s26 }
 0x50a   :  { %447 = vrot.lane.b32.xlu0 %v2477_v39, %s2171_s1  ;;  %s2191_s1 = smov 56  }
 0x50b   :  { %594 = vrot.lane.b32.xlu1 %v2479_v42, %s2190_s15 }
 0x50e   :  { %544 = vrot.lane.b32.xlu0 %v2477_v39, %s2190_s15 }
 0x581   :  { %v437_v6 = vpop.xlane.xlu0 %436 }
 0x582   :  { %1813 = vrcp.f32 %v437_v6 }
 0x583   :  { %v440_v7 = vpop.xlane.xlu1 %439 }
 0x584   :  { %1815 = vrcp.f32 %v440_v7 }
 0x585   :  { %v448_v8 = vpop.permute.xlu0 %447 }
 0x586   :  { %v454_v9 = vsel %vm452_vm3, %v448_v8, 0 }
 0x587   :  { %1637 = vmatpush3.bf16.msra.mxu1 %v454_v9  ;;  %v597_v16 = vpop.permute.xlu1 %596 }
 0x588   :  { %1648 = vmatprep.subr.bf16.mxu1 %v2186_v15  ;;  %v602_v19 = vsel %vm327_vm2, %v597_v16, 0 }
 0x589   :  { %v545_v20 = vpop.permute.xlu0 %544 }
 0x58b   :  { %v595_v21 = vpop.permute.xlu1 %594 }
 0x58c   :  { %v1814_v10 = vpop.eup %1813 }
 0x58d   :  { %v443_v11 = vmul.f32 %v1814_v10, %v1810_v1 }
 0x58e   :  { %v1816_v12 = vpop.eup %1815 }
 0x58f   :  { %v444_v13 = vmul.f32 %v1816_v12, %v1812_v3  ;;  %v445_v14 = vpack.c.bf16 %v443_v11, %v443_v11 }
 0x591   :  { %1639 = vmatmul.mubr.msk.bf16.vlgmr.msra.gmra.mrb[4].mxu1 %vm327_vm2, %v445_v14  ;;  %v446_v18 = vpack.c.bf16 %v444_v13, %v444_v13 }
 0x592   :  { %1649 = vmatpush3.bf16.xpose.msra.mxu1 %v552_v17  ;;  %1650 = vmatprep.mubr.msk.bf16.mxu1 %vm2187_vm1, %v2186_v15 }
 0x593   :  { %1645 = vmatmul.mubr.msk.bf16.vlgmr.msra.gmra.mrb[8].mxu0 %vm327_vm2, %v446_v18  ;;  %1660 = vmatprep.subr.bf16.mxu1 %v2186_v15 }
 0x594   :  { %1655 = vmatpush3.bf16.xpose.msra.mxu0 %v602_v19  ;;  %1656 = vmatprep.mubr.msk.bf16.mxu0 %vm2187_vm1, %v2186_v15 }
 0x595   :  { %1666 = vmatprep.subr.bf16.mxu0 %v2186_v15 }
 0x599   :  { %1651 = vmatmul.mubr.msk.bf16.vlgmr.msra.gmra.mrb[8].mxu1 %vm327_vm2, %v545_v20 }
 0x59a   :  { %1662 = vmatprep.mubr.msk.bf16.mxu1 %vm2187_vm1, %v2186_v15 }
 0x59b   :  { %1657 = vmatmul.mubr.msk.bf16.vlgmr.msra.gmra.mrb[12].mxu0 %vm327_vm2, %v595_v21 }
 0x59c   :  { %1668 = vmatprep.mubr.msk.bf16.mxu0 %vm2187_vm1, %v2186_v15 }
 0x664   :  { %v2527_v22 = vpop.f32.mrb[4].mxu1 }
 0x665   :  { %v1640_v23 = vpop.f32.mrb[5].mxu1 }
 0x666   :  { %v493_v24 = vpop.f32.mrb[6].mxu1  ;;  %v2529_v25 = vpop.f32.mrb[8].mxu0 }
 0x667   :  { %v1641_v26 = vpop.f32.mrb[7].mxu1  ;;  %v1646_v27 = vpop.f32.mrb[9].mxu0 }
 0x668   :  { %v541_v28 = vpop.f32.mrb[10].mxu0 }
 0x669   :  { %v1647_v29 = vpop.f32.mrb[11].mxu0 }
 0x66c   :  { %v588_v30 = vpop.f32.mrb[8].mxu1 }
 0x66d   :  { %v1652_v33 = vpop.f32.mrb[9].mxu1  ;;  %v644_v34 = vsel %vm327_vm2, %v588_v30, -inf }
 0x66e   :  { %645 = vmax.xlane.f32.xlu0 %v644_v34  ;;  %v591_v35 = vpop.f32.mrb[10].mxu1  ;;  %v638_v36 = vpop.f32.mrb[12].mxu0 }
 0x66f   :  { %v1653_v37 = vpop.f32.mrb[11].mxu1  ;;  %v1658_v38 = vpop.f32.mrb[13].mxu0  ;;  %v647_v40 = vsel %vm327_vm2, %v638_v36, -inf }
 0x670   :  { %648 = vmax.xlane.f32.xlu1 %v647_v40  ;;  %v641_v41 = vpop.f32.mrb[14].mxu0 }
 0x671   :  { %v1659_v43 = vpop.f32.mrb[15].mxu0 }
 0x681   :  { %716 = vrot.lane.b32.xlu1 %v2479_v42, %s2191_s1 }
 0x685   :  { %766 = vrot.lane.b32.xlu1 %v2477_v39, %s2192_s16 }
 0x689   :  { %816 = vrot.lane.b32.xlu1 %v2479_v42, %s2192_s16 }
 0x68d   :  { %814 = vrot.lane.b32.xlu1 %v2479_v42, %s2193_s0 }
 0x6fb   :  { %v646_v44 = vpop.xlane.xlu0 %645 }
 0x6fc   :  { %v650_v45 = vsub.f32 %v588_v30, %v646_v44 }
 0x6fd   :  { %v649_v46 = vpop.xlane.xlu1 %648 }
 0x6fe   :  { %v652_v47 = vmul.f32 1.442695, %v650_v45  ;;  %v651_v48 = vsub.f32 %v638_v36, %v649_v46 }
 0x700   :  { %1817 = vpow2.f32 %v652_v47  ;;  %v654_v49 = vmul.f32 1.442695, %v651_v48 }
 0x701   :  { %v717_v50 = vpop.permute.xlu1 %716 }
 0x702   :  { %1819 = vpow2.f32 %v654_v49  ;;  %v722_v51 = vsel %vm452_vm3, %v717_v50, 0 }
 0x703   :  { %1667 = vmatpush3.bf16.msra.mxu0 %v722_v51 }
 0x704   :  { %1678 = vmatprep.subr.bf16.mxu0 %v2186_v15 }
 0x705   :  { %v767_v61 = vpop.permute.xlu1 %766 }
 0x706   :  { %v772_v3 = vsel %vm327_vm2, %v767_v61, 0 }
 0x709   :  { %v817_v2 = vpop.permute.xlu1 %816 }
 0x70a   :  { %v1818_v52 = vpop.eup %1817  ;;  %v822_v5 = vsel %vm327_vm2, %v817_v2, 0 }
 0x70b   :  { %v656_v53 = vsel %vm327_vm2, %v1818_v52, 0.0 }
 0x70c   :  { %v1820_v54 = vpop.eup %1819  ;;  %657 = vadd.xlane.f32.xlu0 %v656_v53 }
 0x70d   :  { %v659_v55 = vsel %vm327_vm2, %v1820_v54, 0.0  ;;  %v815_v7 = vpop.permute.xlu1 %814 }
 0x710   :  { %660 = vadd.xlane.f32.xlu0 %v659_v55 }
 0x726   :  { %668 = vrot.lane.b32.xlu0 %v2477_v39, %s2191_s1 }
 0x72a   :  { %764 = vrot.lane.b32.xlu0 %v2477_v39, %s2193_s0 }
 0x799   :  { %v658_v56 = vpop.xlane.xlu0 %657 }
 0x79a   :  { %1821 = vrcp.f32 %v658_v56 }
 0x79d   :  { %v661_v57 = vpop.xlane.xlu0 %660 }
 0x79e   :  { %1823 = vrcp.f32 %v661_v57 }
 0x7a1   :  { %v669_v58 = vpop.permute.xlu0 %668 }
 0x7a2   :  { %v674_v59 = vsel %vm452_vm3, %v669_v58, 0 }
 0x7a3   :  { %1661 = vmatpush3.bf16.msra.mxu1 %v674_v59 }
 0x7a4   :  { %v1822_v60 = vpop.eup %1821  ;;  %1672 = vmatprep.subr.bf16.mxu1 %v2186_v15 }
 0x7a5   :  { %v664_v62 = vmul.f32 %v1822_v60, %v1818_v52  ;;  %v765_v6 = vpop.permute.xlu0 %764 }
 0x7a7   :  { %v666_v63 = vpack.c.bf16 %v664_v62, %v664_v62 }
 0x7a8   :  { %v1824_v0 = vpop.eup %1823 }
 0x7a9   :  { %v665_v1 = vmul.f32 %v1824_v0, %v1820_v54  ;;  %1663 = vmatmul.mubr.msk.bf16.vlgmr.msra.gmra.mrb[12].mxu1 %vm327_vm2, %v666_v63 }
 0x7aa   :  { %1674 = vmatprep.mubr.msk.bf16.mxu1 %vm2187_vm1, %v2186_v15 }
 0x7ab   :  { %v667_v4 = vpack.c.bf16 %v665_v1, %v665_v1 }
 0x7ac   :  { %1673 = vmatpush3.bf16.xpose.msra.mxu1 %v772_v3 }
 0x7ad   :  { %1669 = vmatmul.mubr.msk.bf16.vlgmr.msra.gmra.mrb[16].mxu0 %vm327_vm2, %v667_v4  ;;  %1684 = vmatprep.subr.bf16.mxu1 %v2186_v15 }
 0x7ae   :  { %1679 = vmatpush3.bf16.xpose.msra.mxu0 %v822_v5  ;;  %1680 = vmatprep.mubr.msk.bf16.mxu0 %vm2187_vm1, %v2186_v15 }
 0x7af   :  { %1690 = vmatprep.subr.bf16.mxu0 %v2186_v15 }
 0x7b3   :  { %1675 = vmatmul.mubr.msk.bf16.vlgmr.msra.gmra.mrb[16].mxu1 %vm327_vm2, %v765_v6 }
 0x7b4   :  { %1686 = vmatprep.mubr.msk.bf16.mxu1 %vm2187_vm1, %v2186_v15 }
 0x7b5   :  { %1681 = vmatmul.mubr.msk.bf16.vlgmr.msra.gmra.mrb[20].mxu0 %vm327_vm2, %v815_v7 }
 0x7b6   :  { %1692 = vmatprep.mubr.msk.bf16.mxu0 %vm2187_vm1, %v2186_v15 }
 0x87c   :  { %v2561_v8 = vpop.f32.mrb[12].mxu1 }
 0x87d   :  { %v1664_v9 = vpop.f32.mrb[13].mxu1 }
 0x87e   :  { %v713_v10 = vpop.f32.mrb[14].mxu1 }
 0x87f   :  { %v1665_v11 = vpop.f32.mrb[15].mxu1 }
 0x880   :  { %v2563_v12 = vpop.f32.mrb[16].mxu0 }
 0x881   :  { %v1780_v13 = vpack.i.bf16 %v2563_v12, %v2561_v8  ;;  %v1670_v14 = vpop.f32.mrb[17].mxu0 }
 0x882   :  { %v761_v16 = vpop.f32.mrb[18].mxu0 }
 0x883   :  { %v1671_v17 = vpop.f32.mrb[19].mxu0 }
 0x886   :  { %v808_v18 = vpop.f32.mrb[16].mxu1 }
 0x887   :  { %v1676_v19 = vpop.f32.mrb[17].mxu1  ;;  %v864_v20 = vsel %vm327_vm2, %v808_v18, -inf }
 0x888   :  { %865 = vmax.xlane.f32.xlu0 %v864_v20  ;;  %v811_v21 = vpop.f32.mrb[18].mxu1  ;;  %v858_v23 = vpop.f32.mrb[20].mxu0 }
 0x889   :  { %v1677_v24 = vpop.f32.mrb[19].mxu1  ;;  %v1682_v26 = vpop.f32.mrb[21].mxu0  ;;  %v867_v27 = vsel %vm327_vm2, %v858_v23, -inf }
 0x88a   :  { %868 = vmax.xlane.f32.xlu1 %v867_v27  ;;  %v861_v28 = vpop.f32.mrb[22].mxu0 }
 0x88b   :  { %v1683_v29 = vpop.f32.mrb[23].mxu0 }
 0x89b   :  { %936 = vrot.lane.b32.xlu1 %v2479_v42, %s2194_s14 }
 0x89f   :  { %986 = vrot.lane.b32.xlu1 %v2477_v39, %s2195_s17 }
 0x8a3   :  { %1036 = vrot.lane.b32.xlu1 %v2479_v42, %s2195_s17 }
 0x8a7   :  { %1034 = vrot.lane.b32.xlu1 %v2479_v42, %s2196_s18 }
 0x915   :  { %v866_v30 = vpop.xlane.xlu0 %865 }
 0x916   :  { %v870_v33 = vsub.f32 %v808_v18, %v866_v30 }
 0x917   :  { %v869_v34 = vpop.xlane.xlu1 %868 }
 0x918   :  { %v872_v35 = vmul.f32 1.442695, %v870_v33  ;;  %v871_v36 = vsub.f32 %v858_v23, %v869_v34 }
 0x91a   :  { %1825 = vpow2.f32 %v872_v35  ;;  %v874_v37 = vmul.f32 1.442695, %v871_v36 }
 0x91b   :  { %v937_v38 = vpop.permute.xlu1 %936 }
 0x91c   :  { %1827 = vpow2.f32 %v874_v37  ;;  %v942_v40 = vsel %vm452_vm3, %v937_v38, 0 }
 0x91d   :  { %1691 = vmatpush3.bf16.msra.mxu0 %v942_v40 }
 0x91e   :  { %1702 = vmatprep.subr.bf16.mxu0 %v2186_v15 }
 0x91f   :  { %v987_v51 = vpop.permute.xlu1 %986 }
 0x920   :  { %v992_v57 = vsel %vm327_vm2, %v987_v51, 0 }
 0x923   :  { %v1037_v56 = vpop.permute.xlu1 %1036 }
 0x924   :  { %v1826_v41 = vpop.eup %1825  ;;  %v1042_v59 = vsel %vm327_vm2, %v1037_v56, 0 }
 0x925   :  { %v876_v43 = vsel %vm327_vm2, %v1826_v41, 0.0 }
 0x926   :  { %v1828_v44 = vpop.eup %1827  ;;  %877 = vadd.xlane.f32.xlu0 %v876_v43 }
 0x927   :  { %v879_v45 = vsel %vm327_vm2, %v1828_v44, 0.0  ;;  %v1035_v61 = vpop.permute.xlu1 %1034 }
 0x92a   :  { %880 = vadd.xlane.f32.xlu0 %v879_v45  ;;  %v1798_v45 = vld [vmem:[#allocation11 + $0x8] sm:$0xff]  }
 0x940   :  { %888 = vrot.lane.b32.xlu0 %v2477_v39, %s2194_s14 }
 0x944   :  { %984 = vrot.lane.b32.xlu0 %v2477_v39, %s2196_s18 }
 0x9b3   :  { %v878_v46 = vpop.xlane.xlu0 %877 }
 0x9b4   :  { %1829 = vrcp.f32 %v878_v46 }
 0x9b7   :  { %v881_v47 = vpop.xlane.xlu0 %880 }
 0x9b8   :  { %1831 = vrcp.f32 %v881_v47 }
 0x9bb   :  { %v889_v48 = vpop.permute.xlu0 %888 }
 0x9bc   :  { %v894_v49 = vsel %vm452_vm3, %v889_v48, 0 }
 0x9bd   :  { %1685 = vmatpush3.bf16.msra.mxu1 %v894_v49 }
 0x9be   :  { %v1830_v50 = vpop.eup %1829  ;;  %1696 = vmatprep.subr.bf16.mxu1 %v2186_v15 }
 0x9bf   :  { %v884_v52 = vmul.f32 %v1830_v50, %v1826_v41  ;;  %v985_v60 = vpop.permute.xlu0 %984 }
 0x9c1   :  { %v886_v53 = vpack.c.bf16 %v884_v52, %v884_v52 }
 0x9c2   :  { %v1832_v54 = vpop.eup %1831 }
 0x9c3   :  { %v885_v55 = vmul.f32 %v1832_v54, %v1828_v44  ;;  %1687 = vmatmul.mubr.msk.bf16.vlgmr.msra.gmra.mrb[20].mxu1 %vm327_vm2, %v886_v53  ;;  %v1797_v44 = vld [vmem:[#allocation11] sm:$0xff]  }
 0x9c4   :  { %1698 = vmatprep.mubr.msk.bf16.mxu1 %vm2187_vm1, %v2186_v15 }
 0x9c5   :  { %v887_v58 = vpack.c.bf16 %v885_v55, %v885_v55 }
 0x9c6   :  { %1697 = vmatpush3.bf16.xpose.msra.mxu1 %v992_v57 }
 0x9c7   :  { %1693 = vmatmul.mubr.msk.bf16.vlgmr.msra.gmra.mrb[24].mxu0 %vm327_vm2, %v887_v58  ;;  %1708 = vmatprep.subr.bf16.mxu1 %v2186_v15 }
 0x9c8   :  { %1703 = vmatpush3.bf16.xpose.msra.mxu0 %v1042_v59  ;;  %1704 = vmatprep.mubr.msk.bf16.mxu0 %vm2187_vm1, %v2186_v15 }
 0x9c9   :  { %1714 = vmatprep.subr.bf16.mxu0 %v2186_v15 }
 0x9cd   :  { %1699 = vmatmul.mubr.msk.bf16.vlgmr.msra.gmra.mrb[24].mxu1 %vm327_vm2, %v985_v60 }
 0x9ce   :  { %1710 = vmatprep.mubr.msk.bf16.mxu1 %vm2187_vm1, %v2186_v15 }
 0x9cf   :  { %1705 = vmatmul.mubr.msk.bf16.vlgmr.msra.gmra.mrb[28].mxu0 %vm327_vm2, %v1035_v61 }
 0x9d0   :  { %1716 = vmatprep.mubr.msk.bf16.mxu0 %vm2187_vm1, %v2186_v15 }
 0xa96   :  { %v930_v62 = vpop.f32.mrb[20].mxu1 }
 0xa97   :  { %v1688_v63 = vpop.f32.mrb[21].mxu1 }
 0xa98   :  { %v933_v0 = vpop.f32.mrb[22].mxu1 }
 0xa99   :  { %v1689_v1 = vpop.f32.mrb[23].mxu1 }
 0xa9a   :  { %v978_v2 = vpop.f32.mrb[24].mxu0 }
 0xa9b   :  { %v1785_v3 = vpack.i.bf16 %v978_v2, %v930_v62  ;;  %v1694_v4 = vpop.f32.mrb[25].mxu0 }
 0xa9c   :  { %v981_v5 = vpop.f32.mrb[26].mxu0 }
 0xa9d   :  { %v1695_v6 = vpop.f32.mrb[27].mxu0 }
 0xaa0   :  { %v1028_v7 = vpop.f32.mrb[24].mxu1 }
 0xaa1   :  { %v1700_v9 = vpop.f32.mrb[25].mxu1  ;;  %v1084_v10 = vsel %vm327_vm2, %v1028_v7, -inf }
 0xaa2   :  { %1085 = vmax.xlane.f32.xlu0 %v1084_v10  ;;  %v1031_v11 = vpop.f32.mrb[26].mxu1  ;;  %v1078_v14 = vpop.f32.mrb[28].mxu0 }
 0xaa3   :  { %v1701_v16 = vpop.f32.mrb[27].mxu1  ;;  %v1706_v17 = vpop.f32.mrb[29].mxu0  ;;  %v1087_v18 = vsel %vm327_vm2, %v1078_v14, -inf }
 0xaa4   :  { %1088 = vmax.xlane.f32.xlu1 %v1087_v18  ;;  %v1081_v19 = vpop.f32.mrb[30].mxu0 }
 0xaa5   :  { %v1707_v20 = vpop.f32.mrb[31].mxu0 }
 0xab5   :  { %1156 = vrot.lane.b32.xlu1 %v2479_v42, %s2197_s7 }
 0xab9   :  { %1781 = vrot.lane.b32.xlu1 %v1780_v13, %s2179_s30 }
 0xabd   :  { %1786 = vrot.lane.b32.xlu1 %v1785_v3, %s2198_s4 }
 0xb2f   :  { %v1086_v21 = vpop.xlane.xlu0 %1085 }
 0xb30   :  { %v1090_v23 = vsub.f32 %v1028_v7, %v1086_v21  ;;  %v1554_v7 = vld [vmem:[#allocation13] ss:$0 sm:$0xff] }
 0xb31   :  { %v1089_v24 = vpop.xlane.xlu1 %1088 }
 0xb32   :  { %v1092_v26 = vmul.f32 1.442695, %v1090_v23  ;;  %v1091_v27 = vsub.f32 %v1078_v14, %v1089_v24 }
 0xb34   :  { %1833 = vpow2.f32 %v1092_v26  ;;  %v1094_v28 = vmul.f32 1.442695, %v1091_v27 }
 0xb35   :  { %v1157_v29 = vpop.permute.xlu1 %1156 }
 0xb36   :  { %1835 = vpow2.f32 %v1094_v28  ;;  %v1162_v30 = vsel %vm452_vm3, %v1157_v29, 0 }
 0xb37   :  { %1715 = vmatpush3.bf16.msra.mxu0 %v1162_v30 }
 0xb38   :  { %1728 = vmatprep.subr.bf16.mxu0 %v2186_v15 }
 0xb39   :  { %v1782_v55 = vpop.permute.xlu1 %1781 }
 0xb3a   :  { %v1784_v57 = vunpack.i.h.bf16 %v1782_v55  ;;  %v1783_v58 = vunpack.i.l.bf16 %v1782_v55 }
 0xb3c   :  { %v1229_v62 = vsel %vm327_vm2, %v2529_v25, %v1784_v57  ;;  %v1228_v63 = vsel %vm327_vm2, %v2527_v22, %v1783_v58 }
 0xb3d   :  { %v1787_v56 = vpop.permute.xlu1 %1786 }
 0xb3e   :  { %v1834_v42 = vpop.eup %1833  ;;  %v1789_v59 = vunpack.i.h.bf16 %v1787_v56  ;;  %v1788_v60 = vunpack.i.l.bf16 %v1787_v56 }
 0xb3f   :  { %v1096_v8 = vsel %vm327_vm2, %v1834_v42, 0.0 }
 0xb40   :  { %v1836_v12 = vpop.eup %1835  ;;  %1097 = vadd.xlane.f32.xlu0 %v1096_v8  ;;  %v1231_v2 = vsel %vm1230_vm4, %v1228_v63, %v1788_v60  ;;  %v1232_v3 = vsel %vm1230_vm4, %v1229_v62, %v1789_v59  ;;  %v1801_v8 = vld [vmem:[#allocation17] sm:$0xff]  }
 0xb41   :  { %v1099_v13 = vsel %vm327_vm2, %v1836_v12, 0.0  ;;  %v1564_v62 = vld [vmem:[#allocation19] ss:$0 sm:$0xff] }
 0xb44   :  { %1100 = vadd.xlane.f32.xlu0 %v1099_v13 }
 0xb5a   :  { %1108 = vrot.lane.b32.xlu0 %v2477_v39, %s2197_s7 }
 0xbcd   :  { %v1098_v33 = vpop.xlane.xlu0 %1097 }
 0xbce   :  { %1837 = vrcp.f32 %v1098_v33 }
 0xbd1   :  { %v1101_v34 = vpop.xlane.xlu0 %1100 }
 0xbd2   :  { %1839 = vrcp.f32 %v1101_v34 }
 0xbd5   :  { %v1109_v35 = vpop.permute.xlu0 %1108 }
 0xbd6   :  { %v1114_v36 = vsel %vm452_vm3, %v1109_v35, 0 }
 0xbd7   :  { %1709 = vmatpush3.bf16.msra.mxu1 %v1114_v36 }
 0xbd8   :  { %v1838_v37 = vpop.eup %1837  ;;  %1720 = vmatprep.subr.bf16.mxu1 %v2186_v15 }
 0xbd9   :  { %v1104_v38 = vmul.f32 %v1838_v37, %v1834_v42  ;;  %v1799_v42 = vld [vmem:[#allocation14] sm:$0xff]  }
 0xbdb   :  { %v1106_v40 = vpack.c.bf16 %v1104_v38, %v1104_v38 }
 0xbdc   :  { %v1840_v41 = vpop.eup %1839 }
 0xbdd   :  { %v1105_v43 = vmul.f32 %v1840_v41, %v1836_v12  ;;  %1711 = vmatmul.mubr.msk.bf16.vlgmr.msra.gmra.mrb[28].mxu1 %vm327_vm2, %v1106_v40  ;;  %v1802_v12 = vld [vmem:[#allocation17 + $0x8] sm:$0xff]   ;;  %v1558_v41 = vld [vmem:[#allocation20] ss:$0 sm:$0xff] }
 0xbde   :  { %1724 = vmatprep.mubr.msk.bf16.mxu1 %vm2187_vm1, %v2186_v15  ;;  %1721 = vmatpush3.bf16.msra.mxu1 %v1797_v44 }
 0xbdf   :  { %v1107_v39 = vpack.c.bf16 %v1105_v43, %v1105_v43  ;;  %1722 = vmatprep.subr.bf16.mxu1 %v2186_v15 }
 0xbe1   :  { %1717 = vmatmul.mubr.msk.bf16.vlgmr.msra.gmra.mrb[32].mxu0 %vm327_vm2, %v1107_v39 }
 0xbe2   :  { %1732 = vmatprep.mubr.msk.bf16.mxu0 %vm2187_vm1, %v2186_v15  ;;  %1723 = vmatpush3.bf16.msra.mxu1 %v1798_v45  ;;  %v1559_v45 = vld [vmem:[#allocation22] ss:$0 sm:$0xff] }
 0xbe3   :  { %1736 = vmatprep.subr.bf16.mxu1 %v2186_v15  ;;  %1729 = vmatpush3.bf16.msra.mxu0 %v1799_v42 }
 0xbe4   :  { %1730 = vmatprep.subr.bf16.mxu0 %v2186_v15 }
 0xcb0   :  { %v1150_v46 = vpop.f32.mrb[28].mxu1 }
 0xcb1   :  { %v1712_v47 = vpop.f32.mrb[29].mxu1 }
 0xcb2   :  { %v1153_v48 = vpop.f32.mrb[30].mxu1 }
 0xcb3   :  { %v1713_v49 = vpop.f32.mrb[31].mxu1 }
 0xcb4   :  { %v1198_v50 = vpop.f32.mrb[32].mxu0 }
 0xcb5   :  { %v1790_v51 = vpack.i.bf16 %v1198_v50, %v1150_v46  ;;  %v1718_v52 = vpop.f32.mrb[33].mxu0  ;;  %v1803_v50 = vld [vmem:[#allocation17 + $0x10] sm:$0xff]  }
 0xcb6   :  { %v1201_v53 = vpop.f32.mrb[34].mxu0  ;;  %v1560_v52 = vld [vmem:[#allocation16] ss:$0 sm:$0xff] }
 0xcb7   :  { %1791 = vrot.lane.b32.xlu0 %v1790_v51, %s2199_s29  ;;  %v1719_v54 = vpop.f32.mrb[35].mxu0  ;;  %v1804_v51 = vld [vmem:[#allocation17 + $0x18] sm:$0xff]  }
 0xd29   :  { %v1792_v61 = vpop.permute.xlu0 %1791 }
 0xd2a   :  { %v1794_v0 = vunpack.i.h.bf16 %v1792_v61  ;;  %v1793_v1 = vunpack.i.l.bf16 %v1792_v61 }
 0xd2c   :  { %v1235_v4 = vsel %vm1233_vm5, %v1232_v3, %v1794_v0  ;;  %v1234_v5 = vsel %vm1233_vm5, %v1231_v2, %v1793_v1 }
 0xd2d   :  { %v1236_v6 = vpack.c.bf16 %v1235_v4, %v1234_v5 }
 0xd2f   :  { %1725 = vmatmul.mubr.msk.bf16.vlgmr.msra.gmra.mrb[32].mxu1 %vm210_vm0, %v1236_v6 }
 0xd30   :  { %1744 = vmatprep.mubr.msk.bf16.mxu1 %vm2187_vm1, %v2186_v15  ;;  %1737 = vmatpush3.bf16.msra.mxu1 %v1801_v8 }
 0xd31   :  { %1738 = vmatprep.subr.bf16.mxu1 %v2186_v15 }
 0xd34   :  { %1739 = vmatpush3.bf16.msra.mxu1 %v1802_v12 }
 0xd35   :  { %1740 = vmatprep.subr.bf16.mxu1 %v2186_v15 }
 0xd38   :  { %1741 = vmatpush3.bf16.msra.mxu1 %v1803_v50 }
 0xd39   :  { %1742 = vmatprep.subr.bf16.mxu1 %v2186_v15 }
 0xd3c   :  { %1743 = vmatpush3.bf16.msra.mxu1 %v1804_v51 }
 0xe02   :  { %v1297_v9 = vpop.f32.mrb[32].mxu1 }
 0xe03   :  { %v1298_v10 = vadd.f32 %v1554_v7, %v1297_v9  ;;  %v1726_v11 = vpop.f32.mrb[33].mxu1 }
 0xe04   :  { %v1300_v25 = vpop.f32.mrb[34].mxu1 }
 0xe05   :  { %v1301_v14 = vadd.f32 %v1554_v7, %v1300_v25  ;;  %v1727_v16 = vpop.f32.mrb[35].mxu1  ;;  %v1304_v22 = vadd.f32 %v1298_v10, %v2468_v31 }
 0xe07   :  { %v1308_v17 = vsel %vm210_vm0, %v1304_v22, 0.0  ;;  %v1305_v18 = vadd.f32 %v1301_v14, %v2470_v32  ;;  %v1800_v32 = vld [vmem:[#allocation14 + $0x8] sm:$0xff]  }
 0xe08   :  { %1309 = vadd.xlane.f32.xlu1 %v1308_v17  ;;  %1731 = vmatpush3.bf16.msra.mxu0 %v1800_v32 }
 0xe09   :  { %v1311_v19 = vsel %vm210_vm0, %v1305_v18, 0.0 }
 0xe0a   :  { %1312 = vadd.xlane.f32.xlu0 %v1311_v19 }
 0xe95   :  { %v1310_v20 = vpop.xlane.xlu1 %1309 }
 0xe96   :  { %v1314_v21 = vmul.f32 0.03125, %v1310_v20 }
 0xe97   :  { %v1313_v23 = vpop.xlane.xlu0 %1312 }
 0xe98   :  { %v1316_v24 = vsub.f32 %v1304_v22, %v1314_v21  ;;  %v1315_v26 = vmul.f32 0.03125, %v1313_v23 }
 0xe9a   :  { %v1317_v27 = vsub.f32 %v1305_v18, %v1315_v26  ;;  %v1318_v28 = vmul.f32 %v1316_v24, %v1316_v24 }
 0xe9c   :  { %v1320_v29 = vsel %vm210_vm0, %v1318_v28, 0.0  ;;  %v1319_v30 = vmul.f32 %v1317_v27, %v1317_v27 }
 0xe9d   :  { %1321 = vadd.xlane.f32.xlu0 %v1320_v29 }
 0xe9e   :  { %v1323_v31 = vsel %vm210_vm0, %v1319_v30, 0.0 }
 0xea1   :  { %1324 = vadd.xlane.f32.xlu0 %v1323_v31 }
 0xf2a   :  { %v1322_v13 = vpop.xlane.xlu0 %1321 }
 0xf2b   :  { %v1326_v33 = vmul.f32 0.03125, %v1322_v13 }
 0xf2d   :  { %v1328_v34 = vadd.f32 1e-12, %v1326_v33 }
 0xf2e   :  { %v1325_v35 = vpop.xlane.xlu0 %1324 }
 0xf2f   :  { %1841 = vrsqrt.f32 %v1328_v34  ;;  %v1327_v36 = vmul.f32 0.03125, %v1325_v35 }
 0xf31   :  { %v1329_v37 = vadd.f32 1e-12, %v1327_v36 }
 0xf33   :  { %1843 = vrsqrt.f32 %v1329_v37 }
 0xf39   :  { %v1842_v38 = vpop.eup %1841 }
 0xf3a   :  { %v1332_v40 = vmul.f32 %v1842_v38, %v1316_v24 }
 0xf3c   :  { %v1340_v39 = vmul.f32 %v1558_v41, %v1332_v40 }
 0xf3d   :  { %v1844_v43 = vpop.eup %1843 }
 0xf3e   :  { %v1333_v44 = vmul.f32 %v1844_v43, %v1317_v27  ;;  %v1348_v47 = vadd.f32 %v1559_v45, %v1340_v39 }
 0xf40   :  { %v1341_v46 = vmul.f32 %v1558_v41, %v1333_v44 }
 0xf42   :  { %v1349_v48 = vadd.f32 %v1559_v45, %v1341_v46 }
 0xf44   :  { %v1350_v49 = vpack.c.bf16 %v1349_v48, %v1348_v47 }
 0xf46   :  { %1733 = vmatmul.mubr.msk.bf16.vlgmr.msra.gmra.mrb[36].mxu0 %vm210_vm0, %v1350_v49 }
0x1019   :  { %v1411_v53 = vpop.f32.mrb[36].mxu0 }
0x101a   :  { %v1412_v54 = vadd.f32 %v1560_v52, %v1411_v53  ;;  %v1734_v55 = vpop.f32.mrb[37].mxu0 }
0x101b   :  { %v1414_v56 = vpop.f32.mrb[38].mxu0 }
0x101c   :  { %v1415_v57 = vadd.f32 %v1560_v52, %v1414_v56  ;;  %v1735_v58 = vpop.f32.mrb[39].mxu0  ;;  %v1418_v59 = vmax.f32 %v1412_v54, 0.0 }
0x101e   :  { %v1419_v60 = vmax.f32 %v1415_v57, 0.0 }
0x1020   :  { %v1420_v61 = vpack.c.bf16 %v1419_v60, %v1418_v59 }
0x1022   :  { %1745 = vmatmul.mubr.msk.bf16.vlgmr.msra.gmra.mrb[36].mxu1 %vm1460_vm6, %v1420_v61 }
0x10f5   :  { %v1498_v63 = vpop.f32.mrb[36].mxu1 }
0x10f6   :  { %v1499_v0 = vadd.f32 %v1564_v62, %v1498_v63  ;;  %v1746_v1 = vpop.f32.mrb[37].mxu1 }
0x10f7   :  { %v1501_v2 = vpop.f32.mrb[38].mxu1 }
0x10f8   :  { %v1505_v15 = vadd.f32 %v1499_v0, %v1348_v47  ;;  %v1502_v3 = vadd.f32 %v1564_v62, %v1501_v2  ;;  %v1747_v4 = vpop.f32.mrb[39].mxu1 }
0x10fa   :  { %1507 = vst.msk [vmem:[#allocation23] sm:$0xff] %vm210_vm0, %v1505_v15  ;;  %v1506_v5 = vadd.f32 %v1502_v3, %v1349_v48 }
0x10fc   :  { %1508 = vst.msk [vmem:[#allocation23 + $0x8] sm:$0xff] %vm210_vm0, %v1506_v5 }
0x10fd   :  { %2142 = shalt.err (!%p2139_p10)
}
0x10fe   :  { %s2143_s23 = scalar_lea.hbm %s2667_s13, 256 }
0x10ff   :  { %p2144_p11 = scmp.ne.s32.totalorder %s2667_s13, %s2143_s23  ;;  %p2147_p12 = scmp.lt.u32.totalorder %s2143_s23, %s2667_s13 }
0x1101   :  { %p2149_p13 = pnand %p2147_p12, %p2144_p11 }
0x1103   :  { %2152 = shalt.err (!%p2149_p13)
}
0x1104   :  { %1520 = dma.vmem_to_hbm [thread:$0]  %s1515_s8, 256, %s2667_s13, [#allocation4], %s2178_s11, %s2178_s11, %s2179_s30  }
0x1105   :  { %2167 = dma.done.wait [#allocation4], 256  }
0x1106   :  { %2168 = vsyncadd [#allocation4], 4294967040 }
0x1107   :  { %1524 = vsyncpa [#allocation3], 1 }
0x1108   :  { %1525 = vsyncpa [#allocation6], 1 }
0x1109   :  { %1526 = vsyncpa [#allocation9], 1 }
0x110a   :  { %1527 = vsyncpa [#allocation12], 1 }
0x110b   :  { %1528 = vsyncpa [#allocation15], 1 }
0x110c   :  { %1529 = vsyncpa [#allocation18], 1 }
0x110d   :  { %1530 = vsyncpa [#allocation21], 1 }
0x110e   :  { %1531 = vsyncpa [#allocation4], 1 }

</bundles_post_ra>
